<compile_context>
chip_gen: v5e
topology: v5e:2x2
jax: 0.10.0
libtpu: 0.0.40
codegen_flags: <defaults>
</compile_context>

<pallas_src>
import jax
import jax.numpy as jnp
from jax import lax
from jax.experimental import pallas as pl
from jax.experimental.pallas import tpu as pltpu

_CHUNK = 256  # in-kernel lane chunk for the layer chain (multiple of 128)


def _round_up(x, m):
    return ((x + m - 1) // m) * m


def ikmlp_kernel(x_ref, w1_ref, b1_ref, w2_ref, b2_ref,
                 w3_ref, b3_ref, w4_ref, b4_ref, o_ref):
    # x_ref: (3, TILE_B); weights: (out, in); biases: (out, 1); o_ref: (4, TILE_B).
    w1 = w1_ref[...]; b1 = b1_ref[...]
    w2 = w2_ref[...]; b2 = b2_ref[...]
    w3 = w3_ref[...]; b3 = b3_ref[...]
    w4 = w4_ref[...]; b4 = b4_ref[...]

    tile_b = x_ref.shape[1]
    n_chunks = tile_b // _CHUNK  # static

    def chunk_body(c, carry):
        off = pl.multiple_of(c * _CHUNK, _CHUNK)
        x = x_ref[:, pl.ds(off, _CHUNK)]                              # (3, CHUNK)

        # Layers 1-2 on the MXU (lane-dense N=CHUNK; K=3 / K=64).
        h = jnp.dot(w1, x, preferred_element_type=jnp.float32) + b1   # (64, CHUNK)
        h = jnp.maximum(h, 0.0)
        h = jnp.dot(w2, h, preferred_element_type=jnp.float32) + b2   # (16, CHUNK)
        h = jnp.maximum(h, 0.0)

        # Layer 3 (16 -> 8) on the VPU: unrolled rank-1 broadcast-FMAs over K.
        h3 = b3 + w3[:, 0:1] * h[0:1, :]                              # (8, CHUNK)
        for k in range(1, 16):
            h3 = h3 + w3[:, k:k + 1] * h[k:k + 1, :]
        h3 = jnp.maximum(h3, 0.0)

        # Layer 4 (8 -> 4) on the VPU.
        h4 = b4 + w4[:, 0:1] * h3[0:1, :]                             # (4, CHUNK)
        for k in range(1, 8):
            h4 = h4 + w4[:, k:k + 1] * h3[k:k + 1, :]

        o_ref[:, pl.ds(off, _CHUNK)] = h4.astype(o_ref.dtype)
        return carry

    lax.fori_loop(0, n_chunks, chunk_body, 0, unroll=min(4, n_chunks))


def ikmlp_forward(x, params, tile_b=16384):
    """x: (B, 3) float32. params: w_i (out, in), b_i (out, 1). Returns (B, 4) f32."""
    B = x.shape[0]
    w1, b1, w2, b2, w3, b3, w4, b4 = (
        params["w1"], params["b1"], params["w2"], params["b2"],
        params["w3"], params["b3"], params["w4"], params["b4"],
    )

    # Large tile by default (amortize per-step overhead, big DMAs); clamp for small
    # batches; always a multiple of the in-kernel chunk.
    tile_b = int(min(int(tile_b), _round_up(B, _CHUNK)))
    tile_b = max(_CHUNK, _round_up(tile_b, _CHUNK))
    n_tiles = pl.cdiv(B, tile_b)
    Bp = n_tiles * tile_b

    xt = x.T  # (3, B) feature-major
    if Bp != B:
        xt = jnp.pad(xt, ((0, 0), (0, Bp - B)))

    # Weights/biases: full blocks, constant index_map -> VMEM-resident across steps.
    resident = lambda a: pl.BlockSpec(a.shape, lambda i: (0, 0))

    # Per-step working set: double-buffered x/out blocks + chunk intermediates +
    # tiny weights.  Ask for generous headroom but stay <= v7x's 64 MiB physical VMEM.
    block_bytes = 4 * tile_b * (2 * 3 + 2 * 4)                 # x + out, double-buffered
    scratch_bytes = 4 * _CHUNK * (64 + 16 + 8 + 8) * 4         # chunk intermediates (slack x4)
    ws = block_bytes + scratch_bytes + (64 << 10)
    vmem_limit = int(min(64 << 20, max(32 << 20, 4 * ws)))

    flops = 2 * (3 * 64 + 64 * 16 + 16 * 8 + 8 * 4) * Bp
    bytes_accessed = 4 * (3 + 4) * Bp + sum(
        4 * int(a.size) for a in (w1, b1, w2, b2, w3, b3, w4, b4))

    out_t = pl.pallas_call(
        ikmlp_kernel,
        out_shape=jax.ShapeDtypeStruct((4, Bp), jnp.float32),
        grid=(n_tiles,),
        in_specs=[
            pl.BlockSpec((3, tile_b), lambda i: (0, i)),   # x tile
            resident(w1), resident(b1),
            resident(w2), resident(b2),
            resident(w3), resident(b3),
            resident(w4), resident(b4),
        ],
        out_specs=pl.BlockSpec((4, tile_b), lambda i: (0, i)),
        compiler_params=pltpu.CompilerParams(
            dimension_semantics=("parallel",),   # shard batch tiles across TCs (v7x)
            vmem_limit_bytes=vmem_limit,
        ),
        cost_estimate=pl.CostEstimate(
            flops=int(flops), transcendentals=0, bytes_accessed=int(bytes_accessed)),
    )(xt, w1, b1, w2, b2, w3, b3, w4, b4)

    return out_t[:, :B].T  # back to (B, 4)


def init_params(key):
    """nn.Linear-style init U(-1/sqrt(fan_in), 1/sqrt(fan_in)); torch (out,in) layout."""
    dims = [(3, 64), (64, 16), (16, 8), (8, 4)]
    params = {}
    keys = jax.random.split(key, 2 * len(dims))
    for i, (fin, fout) in enumerate(dims):
        bound = 1.0 / jnp.sqrt(float(fin))
        w = jax.random.uniform(keys[2 * i], (fout, fin), jnp.float32, -bound, bound)
        b = jax.random.uniform(keys[2 * i + 1], (fout, 1), jnp.float32, -bound, bound)
        params[f"w{i + 1}"] = w
        params[f"b{i + 1}"] = b
    return params


def ikmlp_reference(x, params):
    h = jax.nn.relu(x @ params["w1"].T + params["b1"].T)
    h = jax.nn.relu(h @ params["w2"].T + params["b2"].T)
    h = jax.nn.relu(h @ params["w3"].T + params["b3"].T)
    return h @ params["w4"].T + params["b4"].T


if __name__ == "__main__":
    key = jax.random.PRNGKey(0)
    pkey, xkey = jax.random.split(key)
    params = init_params(pkey)

    # Small demo shape; B deliberately not a multiple of the chunk so the padding
    # path and the multi-chunk in-kernel loop are both exercised.
    B = 300
    x = jax.random.normal(xkey, (B, 3), dtype=jnp.float32)

    out = ikmlp_forward(x, params)           # adaptive tile (clamped to 512 here)
    out = jax.block_until_ready(out)

    ref = ikmlp_reference(x, params)
    assert out.shape == (B, 4), out.shape
    assert jnp.allclose(out, ref, atol=1e-5, rtol=1e-5), (
        float(jnp.max(jnp.abs(out - ref))))

    print("KERNEL_OK")
</pallas_src>

<mosaic_0001>
module attributes {stable_mosaic.version = 11 : i64} {
  func.func @ikmlp_kernel(%arg0: i32, %arg1: memref<3x512xf32, #tpu.memory_space<vmem>>, %arg2: memref<64x3xf32, #tpu.memory_space<vmem>>, %arg3: memref<64x1xf32, #tpu.memory_space<vmem>>, %arg4: memref<16x64xf32, #tpu.memory_space<vmem>>, %arg5: memref<16x1xf32, #tpu.memory_space<vmem>>, %arg6: memref<8x16xf32, #tpu.memory_space<vmem>>, %arg7: memref<8x1xf32, #tpu.memory_space<vmem>>, %arg8: memref<4x8xf32, #tpu.memory_space<vmem>>, %arg9: memref<4x1xf32, #tpu.memory_space<vmem>>, %arg10: memref<4x512xf32, #tpu.memory_space<vmem>>) attributes {dimension_semantics = [#tpu.dimension_semantics<parallel>], iteration_bounds = array<i64: 1>, scalar_prefetch = 0 : i64, scratch_operands = 0 : i64, tpu.core_type = #tpu.core_type<tc>, window_params = [{transform_indices = @transform_0, window_bounds = array<i64: 3, 512>}, {pipeline_mode = #tpu.pipeline_mode<synchronous>, transform_indices = @transform_1, window_bounds = array<i64: 64, 3>}, {pipeline_mode = #tpu.pipeline_mode<synchronous>, transform_indices = @transform_2, window_bounds = array<i64: 64, 1>}, {pipeline_mode = #tpu.pipeline_mode<synchronous>, transform_indices = @transform_3, window_bounds = array<i64: 16, 64>}, {pipeline_mode = #tpu.pipeline_mode<synchronous>, transform_indices = @transform_4, window_bounds = array<i64: 16, 1>}, {pipeline_mode = #tpu.pipeline_mode<synchronous>, transform_indices = @transform_5, window_bounds = array<i64: 8, 16>}, {pipeline_mode = #tpu.pipeline_mode<synchronous>, transform_indices = @transform_6, window_bounds = array<i64: 8, 1>}, {pipeline_mode = #tpu.pipeline_mode<synchronous>, transform_indices = @transform_7, window_bounds = array<i64: 4, 8>}, {pipeline_mode = #tpu.pipeline_mode<synchronous>, transform_indices = @transform_8, window_bounds = array<i64: 4, 1>}, {transform_indices = @transform_9, window_bounds = array<i64: 4, 512>}]} {
    %c0 = arith.constant 0 : index
    %c0_0 = arith.constant 0 : index
    %0 = vector.load %arg2[%c0, %c0_0] : memref<64x3xf32, #tpu.memory_space<vmem>>, vector<64x3xf32>
    %c0_1 = arith.constant 0 : index
    %c0_2 = arith.constant 0 : index
    %1 = vector.load %arg3[%c0_1, %c0_2] : memref<64x1xf32, #tpu.memory_space<vmem>>, vector<64x1xf32>
    %c0_3 = arith.constant 0 : index
    %c0_4 = arith.constant 0 : index
    %2 = vector.load %arg4[%c0_3, %c0_4] : memref<16x64xf32, #tpu.memory_space<vmem>>, vector<16x64xf32>
    %c0_5 = arith.constant 0 : index
    %c0_6 = arith.constant 0 : index
    %3 = vector.load %arg5[%c0_5, %c0_6] : memref<16x1xf32, #tpu.memory_space<vmem>>, vector<16x1xf32>
    %c0_7 = arith.constant 0 : index
    %c0_8 = arith.constant 0 : index
    %4 = vector.load %arg6[%c0_7, %c0_8] : memref<8x16xf32, #tpu.memory_space<vmem>>, vector<8x16xf32>
    %c0_9 = arith.constant 0 : index
    %c0_10 = arith.constant 0 : index
    %5 = vector.load %arg7[%c0_9, %c0_10] : memref<8x1xf32, #tpu.memory_space<vmem>>, vector<8x1xf32>
    %c0_11 = arith.constant 0 : index
    %c0_12 = arith.constant 0 : index
    %6 = vector.load %arg8[%c0_11, %c0_12] : memref<4x8xf32, #tpu.memory_space<vmem>>, vector<4x8xf32>
    %c0_13 = arith.constant 0 : index
    %c0_14 = arith.constant 0 : index
    %7 = vector.load %arg9[%c0_13, %c0_14] : memref<4x1xf32, #tpu.memory_space<vmem>>, vector<4x1xf32>
    %c0_i32 = arith.constant 0 : i32
    %c256_i32 = arith.constant 256 : i32
    %8 = arith.muli %c0_i32, %c256_i32 : i32
    %9 = tpu.assume_multiple %8, 256 : i32
    %c0_15 = arith.constant 0 : index
    %10 = arith.index_cast %9 : i32 to index
    %11 = vector.load %arg1[%c0_15, %10] : memref<3x512xf32, #tpu.memory_space<vmem>>, vector<3x256xf32>
    %cst = arith.constant dense<0.000000e+00> : vector<64x256xf32>
    %12 = tpu.matmul %0, %11, %cst {dimension_numbers = #tpu.dot_dimension_numbers<[1], [0], [0], [1], [0, 0, 1, 1], [], []>} : vector<64x3xf32>, vector<3x256xf32>, vector<64x256xf32> -> vector<64x256xf32>
    %13 = vector.broadcast %1 : vector<64x1xf32> to vector<64x256xf32>
    %14 = arith.addf %12, %13 : vector<64x256xf32>
    %cst_16 = arith.constant 0.000000e+00 : f32
    %15 = vector.broadcast %cst_16 : f32 to vector<64x256xf32>
    %16 = arith.maximumf %14, %15 : vector<64x256xf32>
    %cst_17 = arith.constant dense<0.000000e+00> : vector<16x256xf32>
    %17 = tpu.matmul %2, %16, %cst_17 {dimension_numbers = #tpu.dot_dimension_numbers<[1], [0], [0], [1], [0, 0, 1, 1], [], []>} : vector<16x64xf32>, vector<64x256xf32>, vector<16x256xf32> -> vector<16x256xf32>
    %18 = vector.broadcast %3 : vector<16x1xf32> to vector<16x256xf32>
    %19 = arith.addf %17, %18 : vector<16x256xf32>
    %cst_18 = arith.constant 0.000000e+00 : f32
    %20 = vector.broadcast %cst_18 : f32 to vector<16x256xf32>
    %21 = arith.maximumf %19, %20 : vector<16x256xf32>
    %22 = vector.extract_strided_slice %4 {offsets = [0, 0], sizes = [8, 1], strides = [1, 1]} : vector<8x16xf32> to vector<8x1xf32>
    %23 = vector.extract_strided_slice %21 {offsets = [0, 0], sizes = [1, 256], strides = [1, 1]} : vector<16x256xf32> to vector<1x256xf32>
    %24 = vector.broadcast %22 : vector<8x1xf32> to vector<8x256xf32>
    %25 = vector.broadcast %23 : vector<1x256xf32> to vector<8x256xf32>
    %26 = arith.mulf %24, %25 : vector<8x256xf32>
    %27 = vector.broadcast %5 : vector<8x1xf32> to vector<8x256xf32>
    %28 = arith.addf %27, %26 : vector<8x256xf32>
    %29 = vector.extract_strided_slice %4 {offsets = [0, 1], sizes = [8, 1], strides = [1, 1]} : vector<8x16xf32> to vector<8x1xf32>
    %30 = vector.extract_strided_slice %21 {offsets = [1, 0], sizes = [1, 256], strides = [1, 1]} : vector<16x256xf32> to vector<1x256xf32>
    %31 = vector.broadcast %29 : vector<8x1xf32> to vector<8x256xf32>
    %32 = vector.broadcast %30 : vector<1x256xf32> to vector<8x256xf32>
    %33 = arith.mulf %31, %32 : vector<8x256xf32>
    %34 = arith.addf %28, %33 : vector<8x256xf32>
    %35 = vector.extract_strided_slice %4 {offsets = [0, 2], sizes = [8, 1], strides = [1, 1]} : vector<8x16xf32> to vector<8x1xf32>
    %36 = vector.extract_strided_slice %21 {offsets = [2, 0], sizes = [1, 256], strides = [1, 1]} : vector<16x256xf32> to vector<1x256xf32>
    %37 = vector.broadcast %35 : vector<8x1xf32> to vector<8x256xf32>
    %38 = vector.broadcast %36 : vector<1x256xf32> to vector<8x256xf32>
    %39 = arith.mulf %37, %38 : vector<8x256xf32>
    %40 = arith.addf %34, %39 : vector<8x256xf32>
    %41 = vector.extract_strided_slice %4 {offsets = [0, 3], sizes = [8, 1], strides = [1, 1]} : vector<8x16xf32> to vector<8x1xf32>
    %42 = vector.extract_strided_slice %21 {offsets = [3, 0], sizes = [1, 256], strides = [1, 1]} : vector<16x256xf32> to vector<1x256xf32>
    %43 = vector.broadcast %41 : vector<8x1xf32> to vector<8x256xf32>
    %44 = vector.broadcast %42 : vector<1x256xf32> to vector<8x256xf32>
    %45 = arith.mulf %43, %44 : vector<8x256xf32>
    %46 = arith.addf %40, %45 : vector<8x256xf32>
    %47 = vector.extract_strided_slice %4 {offsets = [0, 4], sizes = [8, 1], strides = [1, 1]} : vector<8x16xf32> to vector<8x1xf32>
    %48 = vector.extract_strided_slice %21 {offsets = [4, 0], sizes = [1, 256], strides = [1, 1]} : vector<16x256xf32> to vector<1x256xf32>
    %49 = vector.broadcast %47 : vector<8x1xf32> to vector<8x256xf32>
    %50 = vector.broadcast %48 : vector<1x256xf32> to vector<8x256xf32>
    %51 = arith.mulf %49, %50 : vector<8x256xf32>
    %52 = arith.addf %46, %51 : vector<8x256xf32>
    %53 = vector.extract_strided_slice %4 {offsets = [0, 5], sizes = [8, 1], strides = [1, 1]} : vector<8x16xf32> to vector<8x1xf32>
    %54 = vector.extract_strided_slice %21 {offsets = [5, 0], sizes = [1, 256], strides = [1, 1]} : vector<16x256xf32> to vector<1x256xf32>
    %55 = vector.broadcast %53 : vector<8x1xf32> to vector<8x256xf32>
    %56 = vector.broadcast %54 : vector<1x256xf32> to vector<8x256xf32>
    %57 = arith.mulf %55, %56 : vector<8x256xf32>
    %58 = arith.addf %52, %57 : vector<8x256xf32>
    %59 = vector.extract_strided_slice %4 {offsets = [0, 6], sizes = [8, 1], strides = [1, 1]} : vector<8x16xf32> to vector<8x1xf32>
    %60 = vector.extract_strided_slice %21 {offsets = [6, 0], sizes = [1, 256], strides = [1, 1]} : vector<16x256xf32> to vector<1x256xf32>
    %61 = vector.broadcast %59 : vector<8x1xf32> to vector<8x256xf32>
    %62 = vector.broadcast %60 : vector<1x256xf32> to vector<8x256xf32>
    %63 = arith.mulf %61, %62 : vector<8x256xf32>
    %64 = arith.addf %58, %63 : vector<8x256xf32>
    %65 = vector.extract_strided_slice %4 {offsets = [0, 7], sizes = [8, 1], strides = [1, 1]} : vector<8x16xf32> to vector<8x1xf32>
    %66 = vector.extract_strided_slice %21 {offsets = [7, 0], sizes = [1, 256], strides = [1, 1]} : vector<16x256xf32> to vector<1x256xf32>
    %67 = vector.broadcast %65 : vector<8x1xf32> to vector<8x256xf32>
    %68 = vector.broadcast %66 : vector<1x256xf32> to vector<8x256xf32>
    %69 = arith.mulf %67, %68 : vector<8x256xf32>
    %70 = arith.addf %64, %69 : vector<8x256xf32>
    %71 = vector.extract_strided_slice %4 {offsets = [0, 8], sizes = [8, 1], strides = [1, 1]} : vector<8x16xf32> to vector<8x1xf32>
    %72 = vector.extract_strided_slice %21 {offsets = [8, 0], sizes = [1, 256], strides = [1, 1]} : vector<16x256xf32> to vector<1x256xf32>
    %73 = vector.broadcast %71 : vector<8x1xf32> to vector<8x256xf32>
    %74 = vector.broadcast %72 : vector<1x256xf32> to vector<8x256xf32>
    %75 = arith.mulf %73, %74 : vector<8x256xf32>
    %76 = arith.addf %70, %75 : vector<8x256xf32>
    %77 = vector.extract_strided_slice %4 {offsets = [0, 9], sizes = [8, 1], strides = [1, 1]} : vector<8x16xf32> to vector<8x1xf32>
    %78 = vector.extract_strided_slice %21 {offsets = [9, 0], sizes = [1, 256], strides = [1, 1]} : vector<16x256xf32> to vector<1x256xf32>
    %79 = vector.broadcast %77 : vector<8x1xf32> to vector<8x256xf32>
    %80 = vector.broadcast %78 : vector<1x256xf32> to vector<8x256xf32>
    %81 = arith.mulf %79, %80 : vector<8x256xf32>
    %82 = arith.addf %76, %81 : vector<8x256xf32>
    %83 = vector.extract_strided_slice %4 {offsets = [0, 10], sizes = [8, 1], strides = [1, 1]} : vector<8x16xf32> to vector<8x1xf32>
    %84 = vector.extract_strided_slice %21 {offsets = [10, 0], sizes = [1, 256], strides = [1, 1]} : vector<16x256xf32> to vector<1x256xf32>
    %85 = vector.broadcast %83 : vector<8x1xf32> to vector<8x256xf32>
    %86 = vector.broadcast %84 : vector<1x256xf32> to vector<8x256xf32>
    %87 = arith.mulf %85, %86 : vector<8x256xf32>
    %88 = arith.addf %82, %87 : vector<8x256xf32>
    %89 = vector.extract_strided_slice %4 {offsets = [0, 11], sizes = [8, 1], strides = [1, 1]} : vector<8x16xf32> to vector<8x1xf32>
    %90 = vector.extract_strided_slice %21 {offsets = [11, 0], sizes = [1, 256], strides = [1, 1]} : vector<16x256xf32> to vector<1x256xf32>
    %91 = vector.broadcast %89 : vector<8x1xf32> to vector<8x256xf32>
    %92 = vector.broadcast %90 : vector<1x256xf32> to vector<8x256xf32>
    %93 = arith.mulf %91, %92 : vector<8x256xf32>
    %94 = arith.addf %88, %93 : vector<8x256xf32>
    %95 = vector.extract_strided_slice %4 {offsets = [0, 12], sizes = [8, 1], strides = [1, 1]} : vector<8x16xf32> to vector<8x1xf32>
    %96 = vector.extract_strided_slice %21 {offsets = [12, 0], sizes = [1, 256], strides = [1, 1]} : vector<16x256xf32> to vector<1x256xf32>
    %97 = vector.broadcast %95 : vector<8x1xf32> to vector<8x256xf32>
    %98 = vector.broadcast %96 : vector<1x256xf32> to vector<8x256xf32>
    %99 = arith.mulf %97, %98 : vector<8x256xf32>
    %100 = arith.addf %94, %99 : vector<8x256xf32>
    %101 = vector.extract_strided_slice %4 {offsets = [0, 13], sizes = [8, 1], strides = [1, 1]} : vector<8x16xf32> to vector<8x1xf32>
    %102 = vector.extract_strided_slice %21 {offsets = [13, 0], sizes = [1, 256], strides = [1, 1]} : vector<16x256xf32> to vector<1x256xf32>
    %103 = vector.broadcast %101 : vector<8x1xf32> to vector<8x256xf32>
    %104 = vector.broadcast %102 : vector<1x256xf32> to vector<8x256xf32>
    %105 = arith.mulf %103, %104 : vector<8x256xf32>
    %106 = arith.addf %100, %105 : vector<8x256xf32>
    %107 = vector.extract_strided_slice %4 {offsets = [0, 14], sizes = [8, 1], strides = [1, 1]} : vector<8x16xf32> to vector<8x1xf32>
    %108 = vector.extract_strided_slice %21 {offsets = [14, 0], sizes = [1, 256], strides = [1, 1]} : vector<16x256xf32> to vector<1x256xf32>
    %109 = vector.broadcast %107 : vector<8x1xf32> to vector<8x256xf32>
    %110 = vector.broadcast %108 : vector<1x256xf32> to vector<8x256xf32>
    %111 = arith.mulf %109, %110 : vector<8x256xf32>
    %112 = arith.addf %106, %111 : vector<8x256xf32>
    %113 = vector.extract_strided_slice %4 {offsets = [0, 15], sizes = [8, 1], strides = [1, 1]} : vector<8x16xf32> to vector<8x1xf32>
    %114 = vector.extract_strided_slice %21 {offsets = [15, 0], sizes = [1, 256], strides = [1, 1]} : vector<16x256xf32> to vector<1x256xf32>
    %115 = vector.broadcast %113 : vector<8x1xf32> to vector<8x256xf32>
    %116 = vector.broadcast %114 : vector<1x256xf32> to vector<8x256xf32>
    %117 = arith.mulf %115, %116 : vector<8x256xf32>
    %118 = arith.addf %112, %117 : vector<8x256xf32>
    %cst_19 = arith.constant 0.000000e+00 : f32
    %119 = vector.broadcast %cst_19 : f32 to vector<8x256xf32>
    %120 = arith.maximumf %118, %119 : vector<8x256xf32>
    %121 = vector.extract_strided_slice %6 {offsets = [0, 0], sizes = [4, 1], strides = [1, 1]} : vector<4x8xf32> to vector<4x1xf32>
    %122 = vector.extract_strided_slice %120 {offsets = [0, 0], sizes = [1, 256], strides = [1, 1]} : vector<8x256xf32> to vector<1x256xf32>
    %123 = vector.broadcast %121 : vector<4x1xf32> to vector<4x256xf32>
    %124 = vector.broadcast %122 : vector<1x256xf32> to vector<4x256xf32>
    %125 = arith.mulf %123, %124 : vector<4x256xf32>
    %126 = vector.broadcast %7 : vector<4x1xf32> to vector<4x256xf32>
    %127 = arith.addf %126, %125 : vector<4x256xf32>
    %128 = vector.extract_strided_slice %6 {offsets = [0, 1], sizes = [4, 1], strides = [1, 1]} : vector<4x8xf32> to vector<4x1xf32>
    %129 = vector.extract_strided_slice %120 {offsets = [1, 0], sizes = [1, 256], strides = [1, 1]} : vector<8x256xf32> to vector<1x256xf32>
    %130 = vector.broadcast %128 : vector<4x1xf32> to vector<4x256xf32>
    %131 = vector.broadcast %129 : vector<1x256xf32> to vector<4x256xf32>
    %132 = arith.mulf %130, %131 : vector<4x256xf32>
    %133 = arith.addf %127, %132 : vector<4x256xf32>
    %134 = vector.extract_strided_slice %6 {offsets = [0, 2], sizes = [4, 1], strides = [1, 1]} : vector<4x8xf32> to vector<4x1xf32>
    %135 = vector.extract_strided_slice %120 {offsets = [2, 0], sizes = [1, 256], strides = [1, 1]} : vector<8x256xf32> to vector<1x256xf32>
    %136 = vector.broadcast %134 : vector<4x1xf32> to vector<4x256xf32>
    %137 = vector.broadcast %135 : vector<1x256xf32> to vector<4x256xf32>
    %138 = arith.mulf %136, %137 : vector<4x256xf32>
    %139 = arith.addf %133, %138 : vector<4x256xf32>
    %140 = vector.extract_strided_slice %6 {offsets = [0, 3], sizes = [4, 1], strides = [1, 1]} : vector<4x8xf32> to vector<4x1xf32>
    %141 = vector.extract_strided_slice %120 {offsets = [3, 0], sizes = [1, 256], strides = [1, 1]} : vector<8x256xf32> to vector<1x256xf32>
    %142 = vector.broadcast %140 : vector<4x1xf32> to vector<4x256xf32>
    %143 = vector.broadcast %141 : vector<1x256xf32> to vector<4x256xf32>
    %144 = arith.mulf %142, %143 : vector<4x256xf32>
    %145 = arith.addf %139, %144 : vector<4x256xf32>
    %146 = vector.extract_strided_slice %6 {offsets = [0, 4], sizes = [4, 1], strides = [1, 1]} : vector<4x8xf32> to vector<4x1xf32>
    %147 = vector.extract_strided_slice %120 {offsets = [4, 0], sizes = [1, 256], strides = [1, 1]} : vector<8x256xf32> to vector<1x256xf32>
    %148 = vector.broadcast %146 : vector<4x1xf32> to vector<4x256xf32>
    %149 = vector.broadcast %147 : vector<1x256xf32> to vector<4x256xf32>
    %150 = arith.mulf %148, %149 : vector<4x256xf32>
    %151 = arith.addf %145, %150 : vector<4x256xf32>
    %152 = vector.extract_strided_slice %6 {offsets = [0, 5], sizes = [4, 1], strides = [1, 1]} : vector<4x8xf32> to vector<4x1xf32>
    %153 = vector.extract_strided_slice %120 {offsets = [5, 0], sizes = [1, 256], strides = [1, 1]} : vector<8x256xf32> to vector<1x256xf32>
    %154 = vector.broadcast %152 : vector<4x1xf32> to vector<4x256xf32>
    %155 = vector.broadcast %153 : vector<1x256xf32> to vector<4x256xf32>
    %156 = arith.mulf %154, %155 : vector<4x256xf32>
    %157 = arith.addf %151, %156 : vector<4x256xf32>
    %158 = vector.extract_strided_slice %6 {offsets = [0, 6], sizes = [4, 1], strides = [1, 1]} : vector<4x8xf32> to vector<4x1xf32>
    %159 = vector.extract_strided_slice %120 {offsets = [6, 0], sizes = [1, 256], strides = [1, 1]} : vector<8x256xf32> to vector<1x256xf32>
    %160 = vector.broadcast %158 : vector<4x1xf32> to vector<4x256xf32>
    %161 = vector.broadcast %159 : vector<1x256xf32> to vector<4x256xf32>
    %162 = arith.mulf %160, %161 : vector<4x256xf32>
    %163 = arith.addf %157, %162 : vector<4x256xf32>
    %164 = vector.extract_strided_slice %6 {offsets = [0, 7], sizes = [4, 1], strides = [1, 1]} : vector<4x8xf32> to vector<4x1xf32>
    %165 = vector.extract_strided_slice %120 {offsets = [7, 0], sizes = [1, 256], strides = [1, 1]} : vector<8x256xf32> to vector<1x256xf32>
    %166 = vector.broadcast %164 : vector<4x1xf32> to vector<4x256xf32>
    %167 = vector.broadcast %165 : vector<1x256xf32> to vector<4x256xf32>
    %168 = arith.mulf %166, %167 : vector<4x256xf32>
    %169 = arith.addf %163, %168 : vector<4x256xf32>
    %c0_20 = arith.constant 0 : index
    %170 = arith.index_cast %9 : i32 to index
    %171 = vector.load %arg10[%c0_20, %170] : memref<4x512xf32, #tpu.memory_space<vmem>>, vector<4x256xf32>
    tpu.vector_store %arg10[%c0_20, %170], %169 {strides = array<i32>} : memref<4x512xf32, #tpu.memory_space<vmem>>, vector<4x256xf32>,
    %c1_i32 = arith.constant 1 : i32
    %c256_i32_21 = arith.constant 256 : i32
    %172 = arith.muli %c1_i32, %c256_i32_21 : i32
    %173 = tpu.assume_multiple %172, 256 : i32
    %c0_22 = arith.constant 0 : index
    %174 = arith.index_cast %173 : i32 to index
    %175 = vector.load %arg1[%c0_22, %174] : memref<3x512xf32, #tpu.memory_space<vmem>>, vector<3x256xf32>
    %cst_23 = arith.constant dense<0.000000e+00> : vector<64x256xf32>
    %176 = tpu.matmul %0, %175, %cst_23 {dimension_numbers = #tpu.dot_dimension_numbers<[1], [0], [0], [1], [0, 0, 1, 1], [], []>} : vector<64x3xf32>, vector<3x256xf32>, vector<64x256xf32> -> vector<64x256xf32>
    %177 = vector.broadcast %1 : vector<64x1xf32> to vector<64x256xf32>
    %178 = arith.addf %176, %177 : vector<64x256xf32>
    %cst_24 = arith.constant 0.000000e+00 : f32
    %179 = vector.broadcast %cst_24 : f32 to vector<64x256xf32>
    %180 = arith.maximumf %178, %179 : vector<64x256xf32>
    %cst_25 = arith.constant dense<0.000000e+00> : vector<16x256xf32>
    %181 = tpu.matmul %2, %180, %cst_25 {dimension_numbers = #tpu.dot_dimension_numbers<[1], [0], [0], [1], [0, 0, 1, 1], [], []>} : vector<16x64xf32>, vector<64x256xf32>, vector<16x256xf32> -> vector<16x256xf32>
    %182 = vector.broadcast %3 : vector<16x1xf32> to vector<16x256xf32>
    %183 = arith.addf %181, %182 : vector<16x256xf32>
    %cst_26 = arith.constant 0.000000e+00 : f32
    %184 = vector.broadcast %cst_26 : f32 to vector<16x256xf32>
    %185 = arith.maximumf %183, %184 : vector<16x256xf32>
    %186 = vector.extract_strided_slice %4 {offsets = [0, 0], sizes = [8, 1], strides = [1, 1]} : vector<8x16xf32> to vector<8x1xf32>
    %187 = vector.extract_strided_slice %185 {offsets = [0, 0], sizes = [1, 256], strides = [1, 1]} : vector<16x256xf32> to vector<1x256xf32>
    %188 = vector.broadcast %186 : vector<8x1xf32> to vector<8x256xf32>
    %189 = vector.broadcast %187 : vector<1x256xf32> to vector<8x256xf32>
    %190 = arith.mulf %188, %189 : vector<8x256xf32>
    %191 = vector.broadcast %5 : vector<8x1xf32> to vector<8x256xf32>
    %192 = arith.addf %191, %190 : vector<8x256xf32>
    %193 = vector.extract_strided_slice %4 {offsets = [0, 1], sizes = [8, 1], strides = [1, 1]} : vector<8x16xf32> to vector<8x1xf32>
    %194 = vector.extract_strided_slice %185 {offsets = [1, 0], sizes = [1, 256], strides = [1, 1]} : vector<16x256xf32> to vector<1x256xf32>
    %195 = vector.broadcast %193 : vector<8x1xf32> to vector<8x256xf32>
    %196 = vector.broadcast %194 : vector<1x256xf32> to vector<8x256xf32>
    %197 = arith.mulf %195, %196 : vector<8x256xf32>
    %198 = arith.addf %192, %197 : vector<8x256xf32>
    %199 = vector.extract_strided_slice %4 {offsets = [0, 2], sizes = [8, 1], strides = [1, 1]} : vector<8x16xf32> to vector<8x1xf32>
    %200 = vector.extract_strided_slice %185 {offsets = [2, 0], sizes = [1, 256], strides = [1, 1]} : vector<16x256xf32> to vector<1x256xf32>
    %201 = vector.broadcast %199 : vector<8x1xf32> to vector<8x256xf32>
    %202 = vector.broadcast %200 : vector<1x256xf32> to vector<8x256xf32>
    %203 = arith.mulf %201, %202 : vector<8x256xf32>
    %204 = arith.addf %198, %203 : vector<8x256xf32>
    %205 = vector.extract_strided_slice %4 {offsets = [0, 3], sizes = [8, 1], strides = [1, 1]} : vector<8x16xf32> to vector<8x1xf32>
    %206 = vector.extract_strided_slice %185 {offsets = [3, 0], sizes = [1, 256], strides = [1, 1]} : vector<16x256xf32> to vector<1x256xf32>
    %207 = vector.broadcast %205 : vector<8x1xf32> to vector<8x256xf32>
    %208 = vector.broadcast %206 : vector<1x256xf32> to vector<8x256xf32>
    %209 = arith.mulf %207, %208 : vector<8x256xf32>
    %210 = arith.addf %204, %209 : vector<8x256xf32>
    %211 = vector.extract_strided_slice %4 {offsets = [0, 4], sizes = [8, 1], strides = [1, 1]} : vector<8x16xf32> to vector<8x1xf32>
    %212 = vector.extract_strided_slice %185 {offsets = [4, 0], sizes = [1, 256], strides = [1, 1]} : vector<16x256xf32> to vector<1x256xf32>
    %213 = vector.broadcast %211 : vector<8x1xf32> to vector<8x256xf32>
    %214 = vector.broadcast %212 : vector<1x256xf32> to vector<8x256xf32>
    %215 = arith.mulf %213, %214 : vector<8x256xf32>
    %216 = arith.addf %210, %215 : vector<8x256xf32>
    %217 = vector.extract_strided_slice %4 {offsets = [0, 5], sizes = [8, 1], strides = [1, 1]} : vector<8x16xf32> to vector<8x1xf32>
    %218 = vector.extract_strided_slice %185 {offsets = [5, 0], sizes = [1, 256], strides = [1, 1]} : vector<16x256xf32> to vector<1x256xf32>
    %219 = vector.broadcast %217 : vector<8x1xf32> to vector<8x256xf32>
    %220 = vector.broadcast %218 : vector<1x256xf32> to vector<8x256xf32>
    %221 = arith.mulf %219, %220 : vector<8x256xf32>
    %222 = arith.addf %216, %221 : vector<8x256xf32>
    %223 = vector.extract_strided_slice %4 {offsets = [0, 6], sizes = [8, 1], strides = [1, 1]} : vector<8x16xf32> to vector<8x1xf32>
    %224 = vector.extract_strided_slice %185 {offsets = [6, 0], sizes = [1, 256], strides = [1, 1]} : vector<16x256xf32> to vector<1x256xf32>
    %225 = vector.broadcast %223 : vector<8x1xf32> to vector<8x256xf32>
    %226 = vector.broadcast %224 : vector<1x256xf32> to vector<8x256xf32>
    %227 = arith.mulf %225, %226 : vector<8x256xf32>
    %228 = arith.addf %222, %227 : vector<8x256xf32>
    %229 = vector.extract_strided_slice %4 {offsets = [0, 7], sizes = [8, 1], strides = [1, 1]} : vector<8x16xf32> to vector<8x1xf32>
    %230 = vector.extract_strided_slice %185 {offsets = [7, 0], sizes = [1, 256], strides = [1, 1]} : vector<16x256xf32> to vector<1x256xf32>
    %231 = vector.broadcast %229 : vector<8x1xf32> to vector<8x256xf32>
    %232 = vector.broadcast %230 : vector<1x256xf32> to vector<8x256xf32>
    %233 = arith.mulf %231, %232 : vector<8x256xf32>
    %234 = arith.addf %228, %233 : vector<8x256xf32>
    %235 = vector.extract_strided_slice %4 {offsets = [0, 8], sizes = [8, 1], strides = [1, 1]} : vector<8x16xf32> to vector<8x1xf32>
    %236 = vector.extract_strided_slice %185 {offsets = [8, 0], sizes = [1, 256], strides = [1, 1]} : vector<16x256xf32> to vector<1x256xf32>
    %237 = vector.broadcast %235 : vector<8x1xf32> to vector<8x256xf32>
    %238 = vector.broadcast %236 : vector<1x256xf32> to vector<8x256xf32>
    %239 = arith.mulf %237, %238 : vector<8x256xf32>
    %240 = arith.addf %234, %239 : vector<8x256xf32>
    %241 = vector.extract_strided_slice %4 {offsets = [0, 9], sizes = [8, 1], strides = [1, 1]} : vector<8x16xf32> to vector<8x1xf32>
    %242 = vector.extract_strided_slice %185 {offsets = [9, 0], sizes = [1, 256], strides = [1, 1]} : vector<16x256xf32> to vector<1x256xf32>
    %243 = vector.broadcast %241 : vector<8x1xf32> to vector<8x256xf32>
    %244 = vector.broadcast %242 : vector<1x256xf32> to vector<8x256xf32>
    %245 = arith.mulf %243, %244 : vector<8x256xf32>
    %246 = arith.addf %240, %245 : vector<8x256xf32>
    %247 = vector.extract_strided_slice %4 {offsets = [0, 10], sizes = [8, 1], strides = [1, 1]} : vector<8x16xf32> to vector<8x1xf32>
    %248 = vector.extract_strided_slice %185 {offsets = [10, 0], sizes = [1, 256], strides = [1, 1]} : vector<16x256xf32> to vector<1x256xf32>
    %249 = vector.broadcast %247 : vector<8x1xf32> to vector<8x256xf32>
    %250 = vector.broadcast %248 : vector<1x256xf32> to vector<8x256xf32>
    %251 = arith.mulf %249, %250 : vector<8x256xf32>
    %252 = arith.addf %246, %251 : vector<8x256xf32>
    %253 = vector.extract_strided_slice %4 {offsets = [0, 11], sizes = [8, 1], strides = [1, 1]} : vector<8x16xf32> to vector<8x1xf32>
    %254 = vector.extract_strided_slice %185 {offsets = [11, 0], sizes = [1, 256], strides = [1, 1]} : vector<16x256xf32> to vector<1x256xf32>
    %255 = vector.broadcast %253 : vector<8x1xf32> to vector<8x256xf32>
    %256 = vector.broadcast %254 : vector<1x256xf32> to vector<8x256xf32>
    %257 = arith.mulf %255, %256 : vector<8x256xf32>
    %258 = arith.addf %252, %257 : vector<8x256xf32>
    %259 = vector.extract_strided_slice %4 {offsets = [0, 12], sizes = [8, 1], strides = [1, 1]} : vector<8x16xf32> to vector<8x1xf32>
    %260 = vector.extract_strided_slice %185 {offsets = [12, 0], sizes = [1, 256], strides = [1, 1]} : vector<16x256xf32> to vector<1x256xf32>
    %261 = vector.broadcast %259 : vector<8x1xf32> to vector<8x256xf32>
    %262 = vector.broadcast %260 : vector<1x256xf32> to vector<8x256xf32>
    %263 = arith.mulf %261, %262 : vector<8x256xf32>
    %264 = arith.addf %258, %263 : vector<8x256xf32>
    %265 = vector.extract_strided_slice %4 {offsets = [0, 13], sizes = [8, 1], strides = [1, 1]} : vector<8x16xf32> to vector<8x1xf32>
    %266 = vector.extract_strided_slice %185 {offsets = [13, 0], sizes = [1, 256], strides = [1, 1]} : vector<16x256xf32> to vector<1x256xf32>
    %267 = vector.broadcast %265 : vector<8x1xf32> to vector<8x256xf32>
    %268 = vector.broadcast %266 : vector<1x256xf32> to vector<8x256xf32>
    %269 = arith.mulf %267, %268 : vector<8x256xf32>
    %270 = arith.addf %264, %269 : vector<8x256xf32>
    %271 = vector.extract_strided_slice %4 {offsets = [0, 14], sizes = [8, 1], strides = [1, 1]} : vector<8x16xf32> to vector<8x1xf32>
    %272 = vector.extract_strided_slice %185 {offsets = [14, 0], sizes = [1, 256], strides = [1, 1]} : vector<16x256xf32> to vector<1x256xf32>
    %273 = vector.broadcast %271 : vector<8x1xf32> to vector<8x256xf32>
    %274 = vector.broadcast %272 : vector<1x256xf32> to vector<8x256xf32>
    %275 = arith.mulf %273, %274 : vector<8x256xf32>
    %276 = arith.addf %270, %275 : vector<8x256xf32>
    %277 = vector.extract_strided_slice %4 {offsets = [0, 15], sizes = [8, 1], strides = [1, 1]} : vector<8x16xf32> to vector<8x1xf32>
    %278 = vector.extract_strided_slice %185 {offsets = [15, 0], sizes = [1, 256], strides = [1, 1]} : vector<16x256xf32> to vector<1x256xf32>
    %279 = vector.broadcast %277 : vector<8x1xf32> to vector<8x256xf32>
    %280 = vector.broadcast %278 : vector<1x256xf32> to vector<8x256xf32>
    %281 = arith.mulf %279, %280 : vector<8x256xf32>
    %282 = arith.addf %276, %281 : vector<8x256xf32>
    %cst_27 = arith.constant 0.000000e+00 : f32
    %283 = vector.broadcast %cst_27 : f32 to vector<8x256xf32>
    %284 = arith.maximumf %282, %283 : vector<8x256xf32>
    %285 = vector.extract_strided_slice %6 {offsets = [0, 0], sizes = [4, 1], strides = [1, 1]} : vector<4x8xf32> to vector<4x1xf32>
    %286 = vector.extract_strided_slice %284 {offsets = [0, 0], sizes = [1, 256], strides = [1, 1]} : vector<8x256xf32> to vector<1x256xf32>
    %287 = vector.broadcast %285 : vector<4x1xf32> to vector<4x256xf32>
    %288 = vector.broadcast %286 : vector<1x256xf32> to vector<4x256xf32>
    %289 = arith.mulf %287, %288 : vector<4x256xf32>
    %290 = vector.broadcast %7 : vector<4x1xf32> to vector<4x256xf32>
    %291 = arith.addf %290, %289 : vector<4x256xf32>
    %292 = vector.extract_strided_slice %6 {offsets = [0, 1], sizes = [4, 1], strides = [1, 1]} : vector<4x8xf32> to vector<4x1xf32>
    %293 = vector.extract_strided_slice %284 {offsets = [1, 0], sizes = [1, 256], strides = [1, 1]} : vector<8x256xf32> to vector<1x256xf32>
    %294 = vector.broadcast %292 : vector<4x1xf32> to vector<4x256xf32>
    %295 = vector.broadcast %293 : vector<1x256xf32> to vector<4x256xf32>
    %296 = arith.mulf %294, %295 : vector<4x256xf32>
    %297 = arith.addf %291, %296 : vector<4x256xf32>
    %298 = vector.extract_strided_slice %6 {offsets = [0, 2], sizes = [4, 1], strides = [1, 1]} : vector<4x8xf32> to vector<4x1xf32>
    %299 = vector.extract_strided_slice %284 {offsets = [2, 0], sizes = [1, 256], strides = [1, 1]} : vector<8x256xf32> to vector<1x256xf32>
    %300 = vector.broadcast %298 : vector<4x1xf32> to vector<4x256xf32>
    %301 = vector.broadcast %299 : vector<1x256xf32> to vector<4x256xf32>
    %302 = arith.mulf %300, %301 : vector<4x256xf32>
    %303 = arith.addf %297, %302 : vector<4x256xf32>
    %304 = vector.extract_strided_slice %6 {offsets = [0, 3], sizes = [4, 1], strides = [1, 1]} : vector<4x8xf32> to vector<4x1xf32>
    %305 = vector.extract_strided_slice %284 {offsets = [3, 0], sizes = [1, 256], strides = [1, 1]} : vector<8x256xf32> to vector<1x256xf32>
    %306 = vector.broadcast %304 : vector<4x1xf32> to vector<4x256xf32>
    %307 = vector.broadcast %305 : vector<1x256xf32> to vector<4x256xf32>
    %308 = arith.mulf %306, %307 : vector<4x256xf32>
    %309 = arith.addf %303, %308 : vector<4x256xf32>
    %310 = vector.extract_strided_slice %6 {offsets = [0, 4], sizes = [4, 1], strides = [1, 1]} : vector<4x8xf32> to vector<4x1xf32>
    %311 = vector.extract_strided_slice %284 {offsets = [4, 0], sizes = [1, 256], strides = [1, 1]} : vector<8x256xf32> to vector<1x256xf32>
    %312 = vector.broadcast %310 : vector<4x1xf32> to vector<4x256xf32>
    %313 = vector.broadcast %311 : vector<1x256xf32> to vector<4x256xf32>
    %314 = arith.mulf %312, %313 : vector<4x256xf32>
    %315 = arith.addf %309, %314 : vector<4x256xf32>
    %316 = vector.extract_strided_slice %6 {offsets = [0, 5], sizes = [4, 1], strides = [1, 1]} : vector<4x8xf32> to vector<4x1xf32>
    %317 = vector.extract_strided_slice %284 {offsets = [5, 0], sizes = [1, 256], strides = [1, 1]} : vector<8x256xf32> to vector<1x256xf32>
    %318 = vector.broadcast %316 : vector<4x1xf32> to vector<4x256xf32>
    %319 = vector.broadcast %317 : vector<1x256xf32> to vector<4x256xf32>
    %320 = arith.mulf %318, %319 : vector<4x256xf32>
    %321 = arith.addf %315, %320 : vector<4x256xf32>
    %322 = vector.extract_strided_slice %6 {offsets = [0, 6], sizes = [4, 1], strides = [1, 1]} : vector<4x8xf32> to vector<4x1xf32>
    %323 = vector.extract_strided_slice %284 {offsets = [6, 0], sizes = [1, 256], strides = [1, 1]} : vector<8x256xf32> to vector<1x256xf32>
    %324 = vector.broadcast %322 : vector<4x1xf32> to vector<4x256xf32>
    %325 = vector.broadcast %323 : vector<1x256xf32> to vector<4x256xf32>
    %326 = arith.mulf %324, %325 : vector<4x256xf32>
    %327 = arith.addf %321, %326 : vector<4x256xf32>
    %328 = vector.extract_strided_slice %6 {offsets = [0, 7], sizes = [4, 1], strides = [1, 1]} : vector<4x8xf32> to vector<4x1xf32>
    %329 = vector.extract_strided_slice %284 {offsets = [7, 0], sizes = [1, 256], strides = [1, 1]} : vector<8x256xf32> to vector<1x256xf32>
    %330 = vector.broadcast %328 : vector<4x1xf32> to vector<4x256xf32>
    %331 = vector.broadcast %329 : vector<1x256xf32> to vector<4x256xf32>
    %332 = arith.mulf %330, %331 : vector<4x256xf32>
    %333 = arith.addf %327, %332 : vector<4x256xf32>
    %c0_28 = arith.constant 0 : index
    %334 = arith.index_cast %173 : i32 to index
    %335 = vector.load %arg10[%c0_28, %334] : memref<4x512xf32, #tpu.memory_space<vmem>>, vector<4x256xf32>
    tpu.vector_store %arg10[%c0_28, %334], %333 {strides = array<i32>} : memref<4x512xf32, #tpu.memory_space<vmem>>, vector<4x256xf32>,
    %c2_i32 = arith.constant 2 : i32
    return
  }
  func.func @transform_0(%arg0: i32) -> (i32, i32) {
    %c0_i32 = arith.constant 0 : i32
    %c0_i32_0 = arith.constant 0 : i32
    return %c0_i32, %arg0 : i32, i32
  }
  func.func @transform_1(%arg0: i32) -> (i32, i32) {
    %c0_i32 = arith.constant 0 : i32
    %c0_i32_0 = arith.constant 0 : i32
    %c0_i32_1 = arith.constant 0 : i32
    return %c0_i32, %c0_i32_0 : i32, i32
  }
  func.func @transform_2(%arg0: i32) -> (i32, i32) {
    %c0_i32 = arith.constant 0 : i32
    %c0_i32_0 = arith.constant 0 : i32
    %c0_i32_1 = arith.constant 0 : i32
    return %c0_i32, %c0_i32_0 : i32, i32
  }
  func.func @transform_3(%arg0: i32) -> (i32, i32) {
    %c0_i32 = arith.constant 0 : i32
    %c0_i32_0 = arith.constant 0 : i32
    %c0_i32_1 = arith.constant 0 : i32
    return %c0_i32, %c0_i32_0 : i32, i32
  }
  func.func @transform_4(%arg0: i32) -> (i32, i32) {
    %c0_i32 = arith.constant 0 : i32
    %c0_i32_0 = arith.constant 0 : i32
    %c0_i32_1 = arith.constant 0 : i32
    return %c0_i32, %c0_i32_0 : i32, i32
  }
  func.func @transform_5(%arg0: i32) -> (i32, i32) {
    %c0_i32 = arith.constant 0 : i32
    %c0_i32_0 = arith.constant 0 : i32
    %c0_i32_1 = arith.constant 0 : i32
    return %c0_i32, %c0_i32_0 : i32, i32
  }
  func.func @transform_6(%arg0: i32) -> (i32, i32) {
    %c0_i32 = arith.constant 0 : i32
    %c0_i32_0 = arith.constant 0 : i32
    %c0_i32_1 = arith.constant 0 : i32
    return %c0_i32, %c0_i32_0 : i32, i32
  }
  func.func @transform_7(%arg0: i32) -> (i32, i32) {
    %c0_i32 = arith.constant 0 : i32
    %c0_i32_0 = arith.constant 0 : i32
    %c0_i32_1 = arith.constant 0 : i32
    return %c0_i32, %c0_i32_0 : i32, i32
  }
  func.func @transform_8(%arg0: i32) -> (i32, i32) {
    %c0_i32 = arith.constant 0 : i32
    %c0_i32_0 = arith.constant 0 : i32
    %c0_i32_1 = arith.constant 0 : i32
    return %c0_i32, %c0_i32_0 : i32, i32
  }
  func.func @transform_9(%arg0: i32) -> (i32, i32) {
    %c0_i32 = arith.constant 0 : i32
    %c0_i32_0 = arith.constant 0 : i32
    return %c0_i32, %arg0 : i32, i32
  }
}

</mosaic_0001>

<bundles_post_ra>
// kernel: tpu_custom_call.1
= control target key start
LH: loop header
LB: loop body
LE: loop exit
PB: predicated region body
PF: predicated region fallthrough
CT: control target
= control target key end

     0   :  { %v1001_v2 = vmov 0   ;;  %s1601_s0 = inlined_call_operand.vmem [shape: f32[3,512], index: 0, kind: input, shape index: {}]   ;;  %s1602_s1 = inlined_call_operand.vmem [shape: f32[64,3], index: 1, kind: input, shape index: {}]   ;;  %s1603_s2 = inlined_call_operand.vmem [shape: f32[64,1], index: 2, kind: input, shape index: {}]   ;;  %s1604_s3 = inlined_call_operand.vmem [shape: f32[16,64], index: 3, kind: input, shape index: {}]   ;;  %s1605_s4 = inlined_call_operand.vmem [shape: f32[16,1], index: 4, kind: input, shape index: {}]   ;;  %s1606_s5 = inlined_call_operand.vmem [shape: f32[8,16], index: 5, kind: input, shape index: {}]   ;;  %s1607_s6 = inlined_call_operand.vmem [shape: f32[8,1], index: 6, kind: input, shape index: {}]   ;;  %s1608_s7 = inlined_call_operand.vmem [shape: f32[4,8], index: 7, kind: input, shape index: {}]   ;;  %s1609_s8 = inlined_call_operand.vmem [shape: f32[4,1], index: 8, kind: input, shape index: {}]   ;;  %s1610_s9 = inlined_call_operand.hbm [shape: f32[4,512], index: 9, kind: output, shape index: {}]  }
   0x1   :  { %v46_v0 = vld [vmem:[%s1603_s2 + $0x28] sm:$0xff]  ;;  %v57_v1 = vld [vmem:[%s1601_s0] sm:$0x77]  ;;  %948 = vset.pattern.permute.xlu1 %v1001_v2  ;;  %947 = vset.pattern.permute.xlu0 %v1001_v2  ;;  %v48_v3 = vld [vmem:[%s1603_s2 + $0x38] sm:$0xff] }
   0x2   :  { %99 = vst [vmem:[#allocation1] ss:$2 sm:$0xff] %v57_v1  ;;  %85 = vperm.xlu1 %948, %v46_v0   ;;  %95 = vperm.xlu0 %947, %v48_v3  }
   0x3   :  { %949 = vset.pattern.permute.xlu2 %v1001_v2 }
   0x4   :  { %14 = vsyncpa [#allocation3], 0  ;;  %vm127_vm0 = vcmask 1042432   ;;  %v907_v4 = vld [vmem:[%s1601_s0 + $0x8] sm:$0x77]  ;;  %v1086_v5 = vld [vmem:[%s1602_s1] sm:$0xff] }
   0x5   :  { %vm102_vm1 = vcmask 23552   ;;  %v45_v6 = vld [vmem:[%s1603_s2 + $0x20] sm:$0xff]  ;;  %v47_v7 = vld [vmem:[%s1603_s2 + $0x30] sm:$0xff]  ;;  %v1103_v10 = vld [vmem:[%s1602_s1 + $0x8] sm:$0xff]  ;;  %v1002_v31 = vmov 2   ;;  %v1003_v36 = vmov 4  }
   0x6   :  { %v41_v11 = vld [vmem:[%s1603_s2] sm:$0xff]  ;;  %v42_v12 = vld [vmem:[%s1603_s2 + $0x8] sm:$0xff]  ;;  %v44_v13 = vld [vmem:[%s1603_s2 + $0x18] sm:$0xff]  ;;  %v1004_v39 = vmov 7   ;;  %v1005_v44 = vmov 9   ;;  %v1006_v46 = vmov 3  }
   0x7   :  { %75 = vperm.xlu2 %949, %v44_v13   ;;  %v1121_v14 = vld [vmem:[%s1602_s1 + $0x10] sm:$0xff]  ;;  %v1133_v16 = vld [vmem:[%s1602_s1 + $0x18] sm:$0xff]  ;;  %v52_v17 = vld [vmem:[%s1605_s4 + $0x8] sm:$0xff]  ;;  %v1007_v47 = vmov 1   ;;  %v1008_v60 = vmov 12   ;;  %v1009_v3 = vmov 5  }
   0x8   :  { %v43_v15 = vld [vmem:[%s1603_s2 + $0x10] sm:$0xff]  ;;  %v1145_v18 = vld [vmem:[%s1606_s5] sm:$0xff]  ;;  %v1166_v22 = vld [vmem:[%s1602_s1 + $0x28] sm:$0xff]  ;;  %vm240_vm2 = vcmask 523264   ;;  %vm554_vm3 = vcmask 1043456   ;;  %s876_s13 = sshll.u32 %s1610_s9, 4  ;;  %s877_s13 = int_to_ptr.hbm [resolvable:$true] %s876_s13 }
   0x9   :  { %v100_v8 = vld.sshfl [vmem:[#allocation1] sm:$0xff pattern:$0x75316420]  ;;  %v101_v9 = vld.sshfl [vmem:[#allocation1 + $0x8] sm:$0xff pattern:$0x75316420] }
   0xa   :  { %885 = vmatpush.msk.msra.mxu0 %vm127_vm0, %v100_v8  ;;  %894 = vmatpush.msk.msra.mxu1 %vm127_vm0, %v101_v9  ;;  %561 = vst [vmem:[#allocation1] ss:$2 sm:$0xff] %v907_v4  ;;  %v51_v19 = vld [vmem:[%s1605_s4] sm:$0xff]  ;;  %v1175_v23 = vld [vmem:[%s1602_s1 + $0x30] sm:$0xff]  ;;  %v1184_v24 = vld [vmem:[%s1602_s1 + $0x38] sm:$0xff]  ;;  %v1010_v4 = vmov 6  }
   0xb   :  { %886 = vmatmul.msk.f32.vlgmr.msra.gmra.mxu0 %vm102_vm1, %v1086_v5  ;;  %895 = vmatmul.msk.f32.vlgmr.msra.gmra.mxu1 %vm102_vm1, %v1086_v5  ;;  %v1154_v20 = vld [vmem:[%s1602_s1 + $0x20] sm:$0xff] }
   0xc   :  { %80 = vperm.xlu1 %948, %v45_v6   ;;  %90 = vperm.xlu0 %947, %v47_v7   ;;  %v54_v21 = vld [vmem:[%s1607_s6] sm:$0xff] }
   0xf   :  { %70 = vperm.xlu2 %949, %v43_v15  }
  0x13   :  { %887 = vmatmul.msk.f32.gmra.mxu0 %vm102_vm1, %v1103_v10  ;;  %896 = vmatmul.msk.f32.gmra.mxu1 %vm102_vm1, %v1103_v10 }
  0x14   :  { %60 = vperm.xlu1 %948, %v41_v11   ;;  %65 = vperm.xlu0 %947, %v42_v12  }
  0x17   :  { %232 = vperm.xlu2 %949, %v51_v19  }
  0x1b   :  { %888 = vmatmul.msk.f32.gmra.mxu0 %vm102_vm1, %v1121_v14  ;;  %897 = vmatmul.msk.f32.gmra.mxu1 %vm102_vm1, %v1121_v14 }
  0x1c   :  { %237 = vperm.xlu0 %947, %v52_v17   ;;  %299 = vperm.xlu1 %948, %v1145_v18  }
  0x1f   :  { %308 = vperm.xlu2 %949, %v54_v21  }
  0x23   :  { %889 = vmatmul.msk.f32.gmra.mxu0 %vm102_vm1, %v1133_v16  ;;  %898 = vmatmul.msk.f32.gmra.mxu1 %vm102_vm1, %v1133_v16 }
  0x24   :  { %951 = vset.pattern.permute.xlu1 %v1002_v31  ;;  %950 = vset.pattern.permute.xlu0 %v1007_v47 }
  0x25   :  { %324 = vperm.xlu1 %951, %v1145_v18   ;;  %314 = vperm.xlu0 %950, %v1145_v18  }
  0x27   :  { %952 = vset.pattern.permute.xlu2 %v1006_v46 }
  0x28   :  { %334 = vperm.xlu2 %952, %v1145_v18  }
  0x2b   :  { %890 = vmatmul.msk.f32.gmra.mxu0 %vm102_vm1, %v1154_v20  ;;  %899 = vmatmul.msk.f32.gmra.mxu1 %vm102_vm1, %v1154_v20 }
  0x2d   :  { %953 = vset.pattern.permute.xlu1 %v1003_v36  ;;  %955 = vset.pattern.permute.xlu0 %v1010_v4 }
  0x2e   :  { %344 = vperm.xlu1 %953, %v1145_v18   ;;  %364 = vperm.xlu0 %955, %v1145_v18  }
  0x30   :  { %954 = vset.pattern.permute.xlu2 %v1009_v3 }
  0x31   :  { %354 = vperm.xlu2 %954, %v1145_v18  }
  0x33   :  { %891 = vmatmul.msk.f32.gmra.mxu0 %vm102_vm1, %v1166_v22  ;;  %900 = vmatmul.msk.f32.gmra.mxu1 %vm102_vm1, %v1166_v22 }
  0x36   :  { %956 = vset.pattern.permute.xlu1 %v1004_v39 }
  0x37   :  { %374 = vperm.xlu1 %956, %v1145_v18  }
  0x3b   :  { %892 = vmatmul.msk.f32.gmra.mxu0 %vm102_vm1, %v1175_v23  ;;  %901 = vmatmul.msk.f32.gmra.mxu1 %vm102_vm1, %v1175_v23 }
  0x3f   :  { %958 = vset.pattern.permute.xlu1 %v1005_v44 }
  0x40   :  { %394 = vperm.xlu1 %958, %v1145_v18  }
  0x43   :  { %893 = vmatmul.msk.f32.gmra.mxu0 %vm102_vm1, %v1184_v24  ;;  %902 = vmatmul.msk.f32.gmra.mxu1 %vm102_vm1, %v1184_v24 }
  0x48   :  { %961 = vset.pattern.permute.xlu1 %v1008_v60 }
  0x49   :  { %424 = vperm.xlu1 %961, %v1145_v18  }
  0x61   :  { %v1213_v45 = vpop.permute.xlu2 %75 }
  0x69   :  { %v1232_v1 = vpop.permute.xlu2 %70 }
  0x74   :  { %v1208_v40 = vpop.permute.xlu0 %95  ;;  %v1210_v41 = vpop.permute.xlu1 %85 }
  0x7e   :  { %v1217_v48 = vpop.permute.xlu0 %90  ;;  %v1221_v49 = vpop.permute.xlu1 %80 }
  0x86   :  { %v1238_v11 = vpop.permute.xlu0 %65  ;;  %v1244_v13 = vpop.permute.xlu1 %60 }
  0x88   :  { %v1190_v25 = vpop.f32.mrf.mxu0  ;;  %v1192_v26 = vpop.f32.mrf.mxu1 }
  0x90   :  { %v1194_v27 = vpop.f32.mrf.mxu0  ;;  %v1196_v28 = vpop.f32.mrf.mxu1 }
  0x91   :  { %v153_v21 = vadd.f32 %v1194_v27, %v1238_v11 }
  0x93   :  { %v216_v27 = vmax.f32 %v153_v21, 0.0 }
  0x98   :  { %v1198_v29 = vpop.f32.mrf.mxu0  ;;  %v1200_v30 = vpop.f32.mrf.mxu1 }
  0x99   :  { %v156_v12 = vadd.f32 %v1198_v29, %v1232_v1  ;;  %v197_v15 = vadd.f32 %v1200_v30, %v1232_v1  ;;  %v191_v30 = vadd.f32 %v1192_v26, %v1244_v13  ;;  %v1260_v26 = vld [vmem:[%s1604_s3] sm:$0xff] }
  0x9b   :  { %v215_v44 = vmax.f32 %v191_v30, 0.0 }
  0xa0   :  { %v158_v32 = vpop.f32.mrf.mxu0  ;;  %v199_v33 = vpop.f32.mrf.mxu1 }
  0xa1   :  { %v159_v6 = vadd.f32 %v158_v32, %v1213_v45  ;;  %v200_v7 = vadd.f32 %v199_v33, %v1213_v45  ;;  %v194_v32 = vadd.f32 %v1196_v28, %v1238_v11 }
  0xa3   :  { %v220_v29 = vmax.f32 %v159_v6, 0.0  ;;  %v221_v33 = vmax.f32 %v200_v7, 0.0  ;;  %v217_v28 = vmax.f32 %v194_v32, 0.0 }
  0xa8   :  { %v161_v34 = vpop.f32.mrf.mxu0  ;;  %v202_v35 = vpop.f32.mrf.mxu1 }
  0xa9   :  { %v162_v61 = vadd.f32 %v161_v34, %v1221_v49  ;;  %v203_v62 = vadd.f32 %v202_v35, %v1221_v49  ;;  %v150_v34 = vadd.f32 %v1190_v25, %v1244_v13  ;;  %v1011_v35 = vmov 14  }
  0xaa   :  { %963 = vset.pattern.permute.xlu1 %v1011_v35 }
  0xab   :  { %v222_v17 = vmax.f32 %v162_v61, 0.0  ;;  %v223_v19 = vmax.f32 %v203_v62, 0.0  ;;  %444 = vperm.xlu1 %963, %v1145_v18   ;;  %v214_v25 = vmax.f32 %v150_v34, 0.0 }
  0xb0   :  { %v164_v37 = vpop.f32.mrf.mxu0  ;;  %v205_v38 = vpop.f32.mrf.mxu1 }
  0xb1   :  { %v165_v56 = vadd.f32 %v164_v37, %v1210_v41  ;;  %v206_v57 = vadd.f32 %v205_v38, %v1210_v41  ;;  %v218_v37 = vmax.f32 %v156_v12, 0.0  ;;  %v219_v38 = vmax.f32 %v197_v15, 0.0 }
  0xb3   :  { %v224_v8 = vmax.f32 %v165_v56, 0.0  ;;  %v225_v9 = vmax.f32 %v206_v57, 0.0  ;;  %966 = vset.pattern.permute.xlu1 %v1001_v2  ;;  %v1015_v56 = vmov 13  }
  0xb8   :  { %v167_v42 = vpop.f32.mrf.mxu0  ;;  %v208_v43 = vpop.f32.mrf.mxu1 }
  0xb9   :  { %v168_v52 = vadd.f32 %v167_v42, %v1217_v48  ;;  %v209_v53 = vadd.f32 %v208_v43, %v1217_v48  ;;  %v1012_v42 = vmov 8   ;;  %v1013_v43 = vmov 11  }
  0xba   :  { %957 = vset.pattern.permute.xlu2 %v1012_v42  ;;  %960 = vset.pattern.permute.xlu0 %v1013_v43 }
  0xbb   :  { %v226_v63 = vmax.f32 %v168_v52, 0.0  ;;  %v227_v0 = vmax.f32 %v209_v53, 0.0  ;;  %384 = vperm.xlu2 %957, %v1145_v18   ;;  %414 = vperm.xlu0 %960, %v1145_v18   ;;  %v56_v52 = vld [vmem:[%s1609_s8] sm:$0xf]  ;;  %v1277_v53 = vld [vmem:[%s1604_s3 + $0x8] sm:$0xff]  ;;  %s1017_s3 = smov [#allocation2]  }
  0xbc   :  { %476 = vperm.xlu1 %966, %v56_v52  }
  0xc0   :  { %v170_v50 = vpop.f32.mrf.mxu0  ;;  %v211_v51 = vpop.f32.mrf.mxu1 }
  0xc1   :  { %v171_v54 = vadd.f32 %v170_v50, %v1208_v40  ;;  %v212_v55 = vadd.f32 %v211_v51, %v1208_v40  ;;  %v562_v50 = vld.sshfl [vmem:[#allocation1] sm:$0xff pattern:$0x75316420]  ;;  %v563_v51 = vld.sshfl [vmem:[#allocation1 + $0x8] sm:$0xff pattern:$0x75316420] }
  0xc3   :  { %v228_v58 = vmax.f32 %v171_v54, 0.0  ;;  %v229_v59 = vmax.f32 %v212_v55, 0.0  ;;  %v1014_v54 = vmov 10   ;;  %965 = vset.pattern.permute.xlu0 %v1001_v2  ;;  %v55_v55 = vld [vmem:[%s1608_s7] sm:$0xf]  ;;  %v1016_v2 = vmov 15  }
  0xc4   :  { %959 = vset.pattern.permute.xlu2 %v1014_v54  ;;  %467 = vperm.xlu0 %965, %v55_v55   ;;  %s874_s7 = sshll.u32 %s1017_s3, 4  ;;  %s875_s7 = int_to_ptr.vmem [resolvable:$true] %s874_s7 }
  0xc5   :  { %255 = vmatpush.msra.mxu2 %v228_v58  ;;  %278 = vmatpush.msra.mxu3 %v229_v59 }
  0xc6   :  { %404 = vperm.xlu2 %959, %v1145_v18   ;;  %968 = vset.pattern.permute.xlu1 %v1002_v31 }
  0xc7   :  { %256 = vmatpush.msra.mxu2 %v226_v63  ;;  %279 = vmatpush.msra.mxu3 %v227_v0 }
  0xc8   :  { %492 = vperm.xlu1 %968, %v55_v55  }
  0xc9   :  { %257 = vmatpush.msra.mxu2 %v224_v8  ;;  %280 = vmatpush.msra.mxu3 %v225_v9 }
  0xcb   :  { %258 = vmatpush.msra.mxu2 %v222_v17  ;;  %281 = vmatpush.msra.mxu3 %v223_v19 }
  0xcc   :  { %970 = vset.pattern.permute.xlu0 %v1003_v36  ;;  %v1348_v36 = vpop.permute.xlu0 %237 }
  0xcd   :  { %259 = vmatpush.msra.mxu2 %v220_v29  ;;  %282 = vmatpush.msra.mxu3 %v221_v33 }
  0xce   :  { %962 = vset.pattern.permute.xlu2 %v1015_v56  ;;  %512 = vperm.xlu0 %970, %v55_v55  }
  0xcf   :  { %260 = vmatpush.msra.mxu2 %v218_v37  ;;  %283 = vmatpush.msra.mxu3 %v219_v38 }
  0xd0   :  { %434 = vperm.xlu2 %962, %v1145_v18   ;;  %971 = vset.pattern.permute.xlu1 %v1009_v3 }
  0xd1   :  { %261 = vmatpush.msra.mxu2 %v216_v27  ;;  %284 = vmatpush.msra.mxu3 %v217_v28 }
  0xd2   :  { %522 = vperm.xlu1 %971, %v55_v55  }
  0xd3   :  { %262 = vmatpush.msra.mxu2 %v214_v25  ;;  %285 = vmatpush.msra.mxu3 %v215_v44 }
  0xd4   :  { %903 = vmatmul.msk.f32.vlgmr.msra.gmra.mxu2 %vm240_vm2, %v1260_v26  ;;  %905 = vmatmul.msk.f32.vlgmr.msra.gmra.mxu3 %vm240_vm2, %v1260_v26  ;;  %v1360_v61 = vpop.permute.xlu0 %314 }
  0xd5   :  { %908 = vmatpush.msk.msrb.mxu2 %vm127_vm0, %v562_v50  ;;  %917 = vmatpush.msk.msrb.mxu3 %vm127_vm0, %v563_v51 }
  0xd6   :  { %974 = vset.pattern.permute.xlu0 %v1004_v39 }
  0xd8   :  { %964 = vset.pattern.permute.xlu2 %v1016_v2 }
  0xd9   :  { %454 = vperm.xlu2 %964, %v1145_v18  }
  0xda   :  { %973 = vset.pattern.permute.xlu1 %v1004_v39 }
  0xdb   :  { %542 = vperm.xlu1 %973, %v55_v55  }
  0xdc   :  { %904 = vmatmul.msk.f32.gmra.mxu2 %vm240_vm2, %v1277_v53  ;;  %906 = vmatmul.msk.f32.gmra.mxu3 %vm240_vm2, %v1277_v53  ;;  %v1392_v2 = vpop.permute.xlu0 %364 }
  0xe1   :  { %967 = vset.pattern.permute.xlu2 %v1007_v47 }
  0xe2   :  { %482 = vperm.xlu2 %967, %v55_v55  }
  0xe4   :  { %909 = vmatmul.msk.f32.vlgmr.msrb.gmra.mxu2 %vm102_vm1, %v1086_v5  ;;  %918 = vmatmul.msk.f32.vlgmr.msrb.gmra.mxu3 %vm102_vm1, %v1086_v5  ;;  %v1330_v5 = vpop.permute.xlu2 %232 }
  0xea   :  { %969 = vset.pattern.permute.xlu2 %v1006_v46 }
  0xeb   :  { %502 = vperm.xlu2 %969, %v55_v55  }
  0xec   :  { %910 = vmatmul.msk.f32.gmra.mxu2 %vm102_vm1, %v1103_v10  ;;  %919 = vmatmul.msk.f32.gmra.mxu3 %vm102_vm1, %v1103_v10  ;;  %v1332_v10 = vpop.permute.xlu1 %299 }
  0xf3   :  { %972 = vset.pattern.permute.xlu2 %v1010_v4 }
  0xf4   :  { %911 = vmatmul.msk.f32.gmra.mxu2 %vm102_vm1, %v1121_v14  ;;  %920 = vmatmul.msk.f32.gmra.mxu3 %vm102_vm1, %v1121_v14  ;;  %v1334_v14 = vpop.permute.xlu2 %308 }
  0xf5   :  { %532 = vperm.xlu2 %972, %v55_v55  }
  0xfc   :  { %912 = vmatmul.msk.f32.gmra.mxu2 %vm102_vm1, %v1133_v16  ;;  %921 = vmatmul.msk.f32.gmra.mxu3 %vm102_vm1, %v1133_v16  ;;  %v1336_v16 = vpop.permute.xlu1 %324  ;;  %v1338_v18 = vpop.permute.xlu2 %334 }
 0x104   :  { %913 = vmatmul.msk.f32.gmra.mxu2 %vm102_vm1, %v1154_v20  ;;  %922 = vmatmul.msk.f32.gmra.mxu3 %vm102_vm1, %v1154_v20  ;;  %v1340_v20 = vpop.permute.xlu1 %344 }
 0x10c   :  { %914 = vmatmul.msk.f32.gmra.mxu2 %vm102_vm1, %v1166_v22  ;;  %923 = vmatmul.msk.f32.gmra.mxu3 %vm102_vm1, %v1166_v22  ;;  %v1342_v22 = vpop.permute.xlu2 %354 }
 0x114   :  { %915 = vmatmul.msk.f32.gmra.mxu2 %vm102_vm1, %v1175_v23  ;;  %924 = vmatmul.msk.f32.gmra.mxu3 %vm102_vm1, %v1175_v23  ;;  %v1344_v23 = vpop.permute.xlu1 %374 }
 0x115   :  { %v1346_v31 = vpop.permute.xlu2 %384 }
 0x11c   :  { %916 = vmatmul.msk.f32.gmra.mxu2 %vm102_vm1, %v1184_v24  ;;  %925 = vmatmul.msk.f32.gmra.mxu3 %vm102_vm1, %v1184_v24  ;;  %v1350_v24 = vpop.permute.xlu1 %394 }
 0x120   :  { %v1358_v60 = vpop.permute.xlu2 %404 }
 0x124   :  { %v1368_v7 = vpop.permute.xlu1 %424 }
 0x125   :  { %1629 = vst [vmem:[#allocation5_spill] sm:$0xff] %v1368_v7 }
 0x12a   :  { %v1390_v56 = vpop.permute.xlu2 %434 }
 0x12b   :  { %1630 = vst [vmem:[#allocation6_spill] sm:$0xff] %v1390_v56 }
 0x157   :  { %v264_v39 = vpop.f32.mrf.mxu2  ;;  %v287_v46 = vpop.f32.mrf.mxu3 }
 0x158   :  { %v265_v47 = vadd.f32 %v264_v39, %v1330_v5  ;;  %v288_v57 = vadd.f32 %v287_v46, %v1330_v5 }
 0x15a   :  { %v1354_v58 = vmax.f32 %v265_v47, 0.0  ;;  %v1356_v59 = vmax.f32 %v288_v57, 0.0 }
 0x15c   :  { %v302_v62 = vperm.slane %v1354_v58, 0  ;;  %v303_v63 = vperm.slane %v1356_v59, 0  ;;  %v317_v0 = vperm.slane %v1354_v58, 1  ;;  %v318_v3 = vperm.slane %v1356_v59, 1 }
 0x15d   :  { %v327_v4 = vperm.slane %v1354_v58, 2  ;;  %v328_v6 = vperm.slane %v1356_v59, 2  ;;  %v337_v12 = vperm.slane %v1354_v58, 3  ;;  %v338_v15 = vperm.slane %v1356_v59, 3 }
 0x15e   :  { %v304_v8 = vmul.f32 %v302_v62, %v1332_v10  ;;  %v305_v9 = vmul.f32 %v303_v63, %v1332_v10  ;;  %v319_v29 = vmul.f32 %v317_v0, %v1360_v61  ;;  %v320_v33 = vmul.f32 %v318_v3, %v1360_v61 }
 0x15f   :  { %v267_v17 = vpop.f32.mrf.mxu2  ;;  %v290_v19 = vpop.f32.mrf.mxu3  ;;  %v329_v34 = vmul.f32 %v327_v4, %v1336_v16  ;;  %v330_v30 = vmul.f32 %v328_v6, %v1336_v16  ;;  %v347_v38 = vperm.slane %v1354_v58, 4  ;;  %v348_v27 = vperm.slane %v1356_v59, 4 }
 0x160   :  { %v311_v21 = vadd.f32 %v1334_v14, %v304_v8  ;;  %v312_v32 = vadd.f32 %v1334_v14, %v305_v9  ;;  %v357_v28 = vperm.slane %v1354_v58, 5  ;;  %v358_v42 = vperm.slane %v1356_v59, 5 }
 0x161   :  { %v339_v44 = vmul.f32 %v337_v12, %v1338_v18  ;;  %v340_v50 = vmul.f32 %v338_v15, %v1338_v18  ;;  %v367_v51 = vperm.slane %v1354_v58, 6  ;;  %v368_v52 = vperm.slane %v1356_v59, 6 }
 0x162   :  { %v321_v35 = vadd.f32 %v319_v29, %v311_v21  ;;  %v322_v37 = vadd.f32 %v320_v33, %v312_v32  ;;  %v268_v54 = vadd.f32 %v267_v17, %v1348_v36  ;;  %v291_v55 = vadd.f32 %v290_v19, %v1348_v36  ;;  %v1408_v17 = vpop.permute.xlu1 %444 }
 0x163   :  { %v349_v47 = vmul.f32 %v347_v38, %v1340_v20  ;;  %v350_v57 = vmul.f32 %v348_v27, %v1340_v20  ;;  %v359_v62 = vmul.f32 %v357_v28, %v1342_v22  ;;  %v360_v63 = vmul.f32 %v358_v42, %v1342_v22  ;;  %1631 = vst [vmem:[#allocation7_spill] sm:$0xff] %v1408_v17 }
 0x164   :  { %v331_v43 = vadd.f32 %v329_v34, %v321_v35  ;;  %v332_v25 = vadd.f32 %v330_v30, %v322_v37  ;;  %v1398_v0 = vmax.f32 %v268_v54, 0.0  ;;  %v1400_v3 = vmax.f32 %v291_v55, 0.0  ;;  %v1428_v55 = vpop.permute.xlu0 %414 }
 0x165   :  { %v377_v12 = vperm.slane %v1354_v58, 7  ;;  %v378_v15 = vperm.slane %v1356_v59, 7  ;;  %v369_v19 = vmul.f32 %v367_v51, %v1392_v2  ;;  %v370_v21 = vmul.f32 %v368_v52, %v1392_v2 }
 0x166   :  { %v341_v39 = vadd.f32 %v339_v44, %v331_v43  ;;  %v342_v46 = vadd.f32 %v340_v50, %v332_v25  ;;  %v387_v33 = vperm.slane %v1398_v0, 0  ;;  %v388_v34 = vperm.slane %v1400_v3, 0 }
 0x167   :  { %v1402_v4 = vpop.f32.mrf.mxu2  ;;  %v1404_v6 = vpop.f32.mrf.mxu3  ;;  %v379_v37 = vmul.f32 %v377_v12, %v1344_v23  ;;  %v380_v58 = vmul.f32 %v378_v15, %v1344_v23  ;;  %v397_v59 = vperm.slane %v1398_v0, 1  ;;  %v398_v38 = vperm.slane %v1400_v3, 1 }
 0x168   :  { %v351_v8 = vadd.f32 %v349_v47, %v341_v39  ;;  %v352_v9 = vadd.f32 %v350_v57, %v342_v46  ;;  %v407_v27 = vperm.slane %v1398_v0, 2  ;;  %v408_v28 = vperm.slane %v1400_v3, 2 }
 0x169   :  { %v389_v25 = vmul.f32 %v387_v33, %v1346_v31  ;;  %v390_v44 = vmul.f32 %v388_v34, %v1346_v31  ;;  %v417_v50 = vperm.slane %v1398_v0, 3  ;;  %v418_v51 = vperm.slane %v1400_v3, 3 }
 0x16a   :  { %v361_v32 = vadd.f32 %v359_v62, %v351_v8  ;;  %v362_v29 = vadd.f32 %v360_v63, %v352_v9  ;;  %v399_v47 = vmul.f32 %v397_v59, %v1350_v24  ;;  %v400_v57 = vmul.f32 %v398_v38, %v1350_v24  ;;  %v1432_v62 = vpop.permute.xlu2 %454 }
 0x16b   :  { %1632 = vst [vmem:[#allocation8_spill] sm:$0xff] %v1432_v62  ;;  %v409_v63 = vmul.f32 %v407_v27, %v1358_v60  ;;  %v410_v8 = vmul.f32 %v408_v28, %v1358_v60  ;;  %v427_v15 = vperm.slane %v1398_v0, 4 }
 0x16c   :  { %v371_v30 = vadd.f32 %v369_v19, %v361_v32  ;;  %v372_v35 = vadd.f32 %v370_v21, %v362_v29  ;;  %v428_v19 = vperm.slane %v1400_v3, 4  ;;  %v1438_v21 = vpop.permute.xlu1 %476  ;;  %v419_v32 = vmul.f32 %v417_v50, %v1428_v55 }
 0x16d   :  { %1633 = vst [vmem:[#allocation9_spill] sm:$0xff] %v1438_v21  ;;  %v420_v29 = vmul.f32 %v418_v51, %v1428_v55  ;;  %v429_v27 = vmul.f32 %v427_v15, %v1368_v7 }
 0x16e   :  { %v381_v42 = vadd.f32 %v379_v37, %v371_v30  ;;  %v382_v43 = vadd.f32 %v380_v58, %v372_v35  ;;  %v437_v30 = vperm.slane %v1398_v0, 5  ;;  %v438_v35 = vperm.slane %v1400_v3, 5 }
 0x16f   :  { %v1424_v52 = vpop.f32.mrf.mxu2  ;;  %v1426_v54 = vpop.f32.mrf.mxu3  ;;  %v447_v37 = vperm.slane %v1398_v0, 6  ;;  %v448_v58 = vperm.slane %v1400_v3, 6  ;;  %v430_v28 = vmul.f32 %v428_v19, %v1368_v7 }
 0x170   :  { %v391_v39 = vadd.f32 %v389_v25, %v381_v42  ;;  %v392_v46 = vadd.f32 %v390_v44, %v382_v43  ;;  %v457_v42 = vperm.slane %v1398_v0, 7  ;;  %v458_v43 = vperm.slane %v1400_v3, 7 }
 0x172   :  { %v401_v9 = vadd.f32 %v399_v47, %v391_v39  ;;  %v402_v12 = vadd.f32 %v400_v57, %v392_v46  ;;  %v439_v39 = vmul.f32 %v437_v30, %v1390_v56  ;;  %v440_v46 = vmul.f32 %v438_v35, %v1390_v56  ;;  %v1456_v47 = vpop.permute.xlu2 %482 }
 0x173   :  { %1634 = vst [vmem:[#allocation10_spill] sm:$0xff] %v1456_v47  ;;  %v449_v57 = vmul.f32 %v447_v37, %v1408_v17  ;;  %v459_v3 = vmul.f32 %v457_v42, %v1432_v62  ;;  %v1468_v37 = vpop.permute.xlu0 %467 }
 0x174   :  { %v411_v33 = vadd.f32 %v409_v63, %v401_v9  ;;  %v412_v34 = vadd.f32 %v410_v8, %v402_v12  ;;  %v450_v63 = vmul.f32 %v448_v58, %v1408_v17  ;;  %v460_v9 = vmul.f32 %v458_v43, %v1432_v62  ;;  %v1462_v19 = vpop.permute.xlu1 %492  ;;  %1636 = vst [vmem:[#allocation12_spill] sm:$0xff] %v1468_v37 }
 0x175   :  { %1635 = vst [vmem:[#allocation11_spill] sm:$0xff] %v1462_v19 }
 0x176   :  { %v421_v59 = vadd.f32 %v419_v32, %v411_v33  ;;  %v422_v38 = vadd.f32 %v420_v29, %v412_v34 }
 0x177   :  { %v1450_v25 = vpop.f32.mrf.mxu2  ;;  %v1452_v44 = vpop.f32.mrf.mxu3 }
 0x178   :  { %v431_v50 = vadd.f32 %v429_v27, %v421_v59  ;;  %v432_v51 = vadd.f32 %v430_v28, %v422_v38 }
 0x17a   :  { %v441_v8 = vadd.f32 %v439_v39, %v431_v50  ;;  %v442_v0 = vadd.f32 %v440_v46, %v432_v51  ;;  %v1470_v38 = vpop.permute.xlu2 %502 }
 0x17b   :  { %1637 = vst [vmem:[#allocation13_spill] sm:$0xff] %v1470_v38 }
 0x17c   :  { %v451_v12 = vadd.f32 %v449_v57, %v441_v8  ;;  %v452_v15 = vadd.f32 %v450_v63, %v442_v0  ;;  %v1474_v57 = vpop.permute.xlu1 %522 }
 0x17e   :  { %v461_v32 = vadd.f32 %v459_v3, %v451_v12  ;;  %v462_v29 = vadd.f32 %v460_v9, %v452_v15 }
 0x17f   :  { %v1464_v33 = vpop.f32.mrf.mxu2  ;;  %v1466_v34 = vpop.f32.mrf.mxu3 }
 0x180   :  { %v463_v30 = vmax.f32 %v461_v32, 0.0  ;;  %v464_v35 = vmax.f32 %v462_v29, 0.0 }
 0x182   :  { %v485_v58 = vperm.slane %v463_v30, 1  ;;  %v486_v59 = vperm.slane %v464_v35, 1  ;;  %v470_v27 = vperm.slane %v463_v30, 0  ;;  %v471_v28 = vperm.slane %v464_v35, 0  ;;  %v1486_v7 = vpop.permute.xlu2 %532 }
 0x183   :  { %v495_v42 = vperm.slane %v463_v30, 2  ;;  %v496_v43 = vperm.slane %v464_v35, 2  ;;  %v505_v39 = vperm.slane %v463_v30, 3  ;;  %v506_v46 = vperm.slane %v464_v35, 3 }
 0x184   :  { %v472_v50 = vmul.f32 %v470_v27, %v1468_v37  ;;  %v473_v51 = vmul.f32 %v471_v28, %v1468_v37  ;;  %v487_v63 = vmul.f32 %v485_v58, %v1456_v47  ;;  %v488_v8 = vmul.f32 %v486_v59, %v1456_v47  ;;  %v1483_v58 = vpop.permute.xlu0 %512 }
 0x185   :  { %v497_v15 = vmul.f32 %v495_v42, %v1462_v19  ;;  %v498_v32 = vmul.f32 %v496_v43, %v1462_v19  ;;  %v515_v28 = vperm.slane %v463_v30, 4  ;;  %v516_v37 = vperm.slane %v464_v35, 4 }
 0x186   :  { %v479_v0 = vadd.f32 %v1438_v21, %v472_v50  ;;  %v480_v3 = vadd.f32 %v1438_v21, %v473_v51  ;;  %v507_v62 = vmul.f32 %v505_v39, %v1470_v38  ;;  %v525_v17 = vperm.slane %v463_v30, 5 }
 0x187   :  { %v597_v9 = vpop.f32.mrf.mxu2  ;;  %v638_v12 = vpop.f32.mrf.mxu3  ;;  %v508_v59 = vmul.f32 %v506_v46, %v1470_v38  ;;  %v526_v50 = vperm.slane %v464_v35, 5  ;;  %v535_v21 = vperm.slane %v463_v30, 6  ;;  %v536_v56 = vperm.slane %v464_v35, 6 }
 0x188   :  { %v489_v29 = vadd.f32 %v487_v63, %v479_v0  ;;  %v490_v27 = vadd.f32 %v488_v8, %v480_v3  ;;  %v517_v63 = vmul.f32 %v515_v28, %v1483_v58  ;;  %v518_v8 = vmul.f32 %v516_v37, %v1483_v58 }
 0x189   :  { %v527_v39 = vmul.f32 %v525_v17, %v1474_v57  ;;  %v528_v0 = vmul.f32 %v526_v50, %v1474_v57  ;;  %v546_v46 = vperm.slane %v464_v35, 7  ;;  %v545_v28 = vperm.slane %v463_v30, 7 }
 0x18a   :  { %v499_v47 = vadd.f32 %v497_v15, %v489_v29  ;;  %v500_v51 = vadd.f32 %v498_v32, %v490_v27  ;;  %v537_v32 = vmul.f32 %v535_v21, %v1486_v7  ;;  %v1493_v29 = vpop.permute.xlu1 %542 }
 0x18b   :  { %v548_v17 = vmul.f32 %v546_v46, %v1493_v29  ;;  %v547_v50 = vmul.f32 %v545_v28, %v1493_v29 }
 0x18c   :  { %v509_v42 = vadd.f32 %v507_v62, %v499_v47  ;;  %v510_v43 = vadd.f32 %v508_v59, %v500_v51  ;;  %v538_v62 = vmul.f32 %v536_v56, %v1486_v7 }
 0x18e   :  { %v519_v3 = vadd.f32 %v517_v63, %v509_v42  ;;  %v520_v19 = vadd.f32 %v518_v8, %v510_v43 }
 0x18f   :  { %v600_v38 = vpop.f32.mrf.mxu2  ;;  %v641_v15 = vpop.f32.mrf.mxu3 }
 0x190   :  { %v529_v47 = vadd.f32 %v527_v39, %v519_v3  ;;  %v530_v27 = vadd.f32 %v528_v0, %v520_v19  ;;  %v601_v3 = vadd.f32 %v600_v38, %v1210_v41  ;;  %v642_v46 = vadd.f32 %v641_v15, %v1210_v41 }
 0x191   :  { %v592_v41 = vadd.f32 %v1450_v25, %v1232_v1  ;;  %v586_v25 = vadd.f32 %v1402_v4, %v1244_v13 }
 0x192   :  { %v539_v59 = vadd.f32 %v537_v32, %v529_v47  ;;  %v540_v37 = vadd.f32 %v538_v62, %v530_v27  ;;  %v598_v47 = vadd.f32 %v597_v9, %v1221_v49  ;;  %v639_v27 = vadd.f32 %v638_v12, %v1221_v49 }
 0x193   :  { %v661_v38 = vmax.f32 %v642_v46, 0.0  ;;  %v633_v49 = vadd.f32 %v1452_v44, %v1232_v1  ;;  %v627_v1 = vadd.f32 %v1404_v6, %v1244_v13  ;;  %v654_v44 = vmax.f32 %v592_v41, 0.0 }
 0x194   :  { %v550_v51 = vadd.f32 %v548_v17, %v540_v37  ;;  %v549_v35 = vadd.f32 %v547_v50, %v539_v59  ;;  %v660_v37 = vmax.f32 %v601_v3, 0.0  ;;  %v658_v9 = vmax.f32 %v598_v47, 0.0 }
 0x195   :  { %v659_v12 = vmax.f32 %v639_v27, 0.0  ;;  %v655_v17 = vmax.f32 %v633_v49, 0.0 }
 0x196   :  { %v553_v42 = vrot.slane %v550_v51, 4 }
 0x197   :  { %v603_v43 = vpop.f32.mrf.mxu2  ;;  %v644_v63 = vpop.f32.mrf.mxu3 }
 0x198   :  { %v555_v21 = vsel %vm554_vm3, %v549_v35, %v553_v42  ;;  %v604_v19 = vadd.f32 %v603_v43, %v1217_v48  ;;  %v645_v30 = vadd.f32 %v644_v63, %v1217_v48  ;;  %v595_v48 = vadd.f32 %v1464_v33, %v1213_v45 }
 0x199   :  { %557 = vst [vmem:[#allocation2] sm:$0xff] %v555_v21  ;;  %v589_v33 = vadd.f32 %v1424_v52, %v1238_v11  ;;  %v650_v52 = vmax.f32 %v586_v25, 0.0 }
 0x19a   :  { %v662_v28 = vmax.f32 %v604_v19, 0.0  ;;  %v663_v59 = vmax.f32 %v645_v30, 0.0 }
 0x19b   :  { %v652_v50 = vmax.f32 %v589_v33, 0.0 }
 0x19f   :  { %v606_v8 = vpop.f32.mrf.mxu2  ;;  %v647_v56 = vpop.f32.mrf.mxu3 }
 0x1a0   :  { %v607_v39 = vadd.f32 %v606_v8, %v1208_v40  ;;  %v648_v0 = vadd.f32 %v647_v56, %v1208_v40  ;;  %v636_v40 = vadd.f32 %v1466_v34, %v1213_v45  ;;  %v630_v45 = vadd.f32 %v1426_v54, %v1238_v11 }
 0x1a1   :  { %v656_v34 = vmax.f32 %v595_v48, 0.0  ;;  %v651_v11 = vmax.f32 %v627_v1, 0.0 }
 0x1a2   :  { %v664_v32 = vmax.f32 %v607_v39, 0.0  ;;  %v665_v62 = vmax.f32 %v648_v0, 0.0  ;;  %v657_v15 = vmax.f32 %v636_v40, 0.0  ;;  %v653_v51 = vmax.f32 %v630_v45, 0.0 }
 0x1a4   :  { %674 = vmatpush.msrb.mxu0 %v664_v32  ;;  %697 = vmatpush.msrb.mxu1 %v665_v62 }
 0x1a6   :  { %675 = vmatpush.msrb.mxu0 %v662_v28  ;;  %698 = vmatpush.msrb.mxu1 %v663_v59 }
 0x1a8   :  { %676 = vmatpush.msrb.mxu0 %v660_v37  ;;  %699 = vmatpush.msrb.mxu1 %v661_v38 }
 0x1aa   :  { %677 = vmatpush.msrb.mxu0 %v658_v9  ;;  %700 = vmatpush.msrb.mxu1 %v659_v12 }
 0x1ac   :  { %678 = vmatpush.msrb.mxu0 %v656_v34  ;;  %701 = vmatpush.msrb.mxu1 %v657_v15 }
 0x1ae   :  { %679 = vmatpush.msrb.mxu0 %v654_v44  ;;  %702 = vmatpush.msrb.mxu1 %v655_v17 }
 0x1b0   :  { %680 = vmatpush.msrb.mxu0 %v652_v50  ;;  %703 = vmatpush.msrb.mxu1 %v653_v51 }
 0x1b2   :  { %681 = vmatpush.msrb.mxu0 %v650_v52  ;;  %704 = vmatpush.msrb.mxu1 %v651_v11 }
 0x1b3   :  { %926 = vmatmul.msk.f32.vlgmr.msrb.gmra.mxu0 %vm240_vm2, %v1260_v26  ;;  %928 = vmatmul.msk.f32.vlgmr.msrb.gmra.mxu1 %vm240_vm2, %v1260_v26 }
 0x1bb   :  { %927 = vmatmul.msk.f32.gmra.mxu0 %vm240_vm2, %v1277_v53  ;;  %929 = vmatmul.msk.f32.gmra.mxu1 %vm240_vm2, %v1277_v53 }
 0x230   :  { %v683_v13 = vpop.f32.mrf.mxu0  ;;  %v706_v4 = vpop.f32.mrf.mxu1 }
 0x231   :  { %v684_v6 = vadd.f32 %v683_v13, %v1330_v5  ;;  %v707_v54 = vadd.f32 %v706_v4, %v1330_v5 }
 0x233   :  { %v712_v35 = vmax.f32 %v684_v6, 0.0  ;;  %v713_v63 = vmax.f32 %v707_v54, 0.0 }
 0x235   :  { %v716_v42 = vperm.slane %v712_v35, 0  ;;  %v722_v43 = vperm.slane %v712_v35, 1  ;;  %v728_v8 = vperm.slane %v712_v35, 2  ;;  %v734_v26 = vperm.slane %v712_v35, 3 }
 0x236   :  { %v717_v30 = vperm.slane %v713_v63, 0  ;;  %v723_v53 = vperm.slane %v713_v63, 1  ;;  %v740_v39 = vperm.slane %v712_v35, 4  ;;  %v729_v0 = vperm.slane %v713_v63, 2 }
 0x237   :  { %v718_v21 = vmul.f32 %v716_v42, %v1332_v10  ;;  %v724_v19 = vmul.f32 %v722_v43, %v1360_v61  ;;  %v730_v5 = vmul.f32 %v728_v8, %v1336_v16  ;;  %v736_v62 = vmul.f32 %v734_v26, %v1338_v18 }
 0x238   :  { %v686_v3 = vpop.f32.mrf.mxu0  ;;  %v719_v32 = vmul.f32 %v717_v30, %v1332_v10  ;;  %v746_v47 = vperm.slane %v712_v35, 5  ;;  %v735_v27 = vperm.slane %v713_v63, 3  ;;  %v709_v28 = vpop.f32.mrf.mxu1  ;;  %v725_v40 = vmul.f32 %v723_v53, %v1360_v61 }
 0x239   :  { %v720_v56 = vadd.f32 %v718_v21, %v1334_v14  ;;  %v687_v37 = vadd.f32 %v686_v3, %v1348_v36  ;;  %v742_v38 = vmul.f32 %v740_v39, %v1340_v20  ;;  %v752_v41 = vperm.slane %v712_v35, 6 }
 0x23a   :  { %v721_v48 = vadd.f32 %v719_v32, %v1334_v14  ;;  %v731_v49 = vmul.f32 %v729_v0, %v1336_v16  ;;  %v741_v9 = vperm.slane %v713_v63, 4  ;;  %v710_v45 = vadd.f32 %v709_v28, %v1348_v36  ;;  %v1638_v28 = vld [vmem:[#allocation5_spill] sm:$0xff] }
 0x23b   :  { %v726_v46 = vadd.f32 %v724_v19, %v720_v56  ;;  %v1544_v33 = vmax.f32 %v687_v37, 0.0  ;;  %v748_v34 = vmul.f32 %v746_v47, %v1342_v22  ;;  %v758_v15 = vperm.slane %v712_v35, 7 }
 0x23c   :  { %v727_v10 = vadd.f32 %v725_v40, %v721_v48  ;;  %v737_v61 = vmul.f32 %v735_v27, %v1338_v18  ;;  %v747_v1 = vperm.slane %v713_v63, 5  ;;  %v754_v44 = vmul.f32 %v752_v41, %v1392_v2 }
 0x23d   :  { %v732_v59 = vadd.f32 %v730_v5, %v726_v46  ;;  %v743_v17 = vmul.f32 %v741_v9, %v1340_v20  ;;  %v753_v16 = vperm.slane %v713_v63, 6  ;;  %v764_v52 = vperm.slane %v1544_v33, 0 }
 0x23e   :  { %v733_v25 = vadd.f32 %v731_v49, %v727_v10  ;;  %v715_v11 = vmax.f32 %v710_v45, 0.0  ;;  %v760_v36 = vmul.f32 %v758_v15, %v1344_v23  ;;  %v759_v13 = vperm.slane %v713_v63, 7 }
 0x23f   :  { %v738_v12 = vadd.f32 %v736_v62, %v732_v59  ;;  %v749_v54 = vmul.f32 %v747_v1, %v1342_v22  ;;  %v770_v18 = vperm.slane %v1544_v33, 1  ;;  %v755_v35 = vmul.f32 %v753_v16, %v1392_v2 }
 0x240   :  { %v739_v51 = vadd.f32 %v737_v61, %v733_v25  ;;  %v776_v42 = vperm.slane %v1544_v33, 2  ;;  %v766_v21 = vmul.f32 %v764_v52, %v1346_v31  ;;  %v765_v8 = vperm.slane %v715_v11, 0 }
 0x241   :  { %v744_v14 = vadd.f32 %v742_v38, %v738_v12  ;;  %v761_v26 = vmul.f32 %v759_v13, %v1344_v23  ;;  %v782_v56 = vperm.slane %v1544_v33, 3  ;;  %v772_v30 = vmul.f32 %v770_v18, %v1350_v24 }
 0x242   :  { %v745_v6 = vadd.f32 %v743_v17, %v739_v51  ;;  %v771_v22 = vperm.slane %v715_v11, 1  ;;  %v778_v53 = vmul.f32 %v776_v42, %v1358_v60  ;;  %v788_v2 = vperm.slane %v1544_v33, 4  ;;  %v1642_v42 = vld [vmem:[#allocation12_spill] sm:$0xff] }
 0x243   :  { %v750_v50 = vadd.f32 %v748_v34, %v744_v14  ;;  %v767_v3 = vmul.f32 %v765_v8, %v1346_v31  ;;  %v777_v46 = vperm.slane %v715_v11, 2  ;;  %v784_v5 = vmul.f32 %v782_v56, %v1428_v55  ;;  %v1639_v31 = vld [vmem:[#allocation6_spill] sm:$0xff] }
 0x244   :  { %v751_v43 = vadd.f32 %v749_v54, %v745_v6  ;;  %v794_v23 = vperm.slane %v1544_v33, 5  ;;  %v773_v47 = vmul.f32 %v771_v22, %v1350_v24  ;;  %v783_v27 = vperm.slane %v715_v11, 3  ;;  %v1640_v24 = vld [vmem:[#allocation7_spill] sm:$0xff] }
 0x245   :  { %v756_v4 = vadd.f32 %v754_v44, %v750_v50  ;;  %v790_v59 = vmul.f32 %v788_v2, %v1638_v28  ;;  %v800_v48 = vperm.slane %v1544_v33, 6  ;;  %v779_v38 = vmul.f32 %v777_v46, %v1358_v60  ;;  %v1641_v44 = vld [vmem:[#allocation8_spill] sm:$0xff] }
 0x246   :  { %v757_v63 = vadd.f32 %v755_v35, %v751_v43  ;;  %v789_v41 = vperm.slane %v715_v11, 4  ;;  %v796_v49 = vmul.f32 %v794_v23, %v1639_v31  ;;  %v806_v9 = vperm.slane %v1544_v33, 7 }
 0x247   :  { %v762_v20 = vadd.f32 %v760_v36, %v756_v4  ;;  %v785_v45 = vmul.f32 %v783_v27, %v1428_v55  ;;  %v795_v34 = vperm.slane %v715_v11, 5  ;;  %v802_v15 = vmul.f32 %v800_v48, %v1640_v24 }
 0x248   :  { %v763_v39 = vadd.f32 %v761_v26, %v757_v63  ;;  %v791_v61 = vmul.f32 %v789_v41, %v1638_v28  ;;  %v801_v1 = vperm.slane %v715_v11, 6  ;;  %v808_v17 = vmul.f32 %v806_v9, %v1641_v44  ;;  %v1643_v26 = vld [vmem:[#allocation9_spill] sm:$0xff]  ;;  %v1644_v63 = vld [vmem:[#allocation10_spill] sm:$0xff] }
 0x249   :  { %v768_v19 = vadd.f32 %v766_v21, %v762_v20  ;;  %v797_v50 = vmul.f32 %v795_v34, %v1639_v31  ;;  %v807_v51 = vperm.slane %v715_v11, 7 }
 0x24a   :  { %v769_v62 = vadd.f32 %v767_v3, %v763_v39  ;;  %v803_v36 = vmul.f32 %v801_v1, %v1640_v24  ;;  %v1645_v39 = vld [vmem:[#allocation11_spill] sm:$0xff]  ;;  %v1646_v3 = vld [vmem:[#allocation13_spill] sm:$0xff] }
 0x24b   :  { %v774_v0 = vadd.f32 %v772_v30, %v768_v19  ;;  %v809_v4 = vmul.f32 %v807_v51, %v1641_v44 }
 0x24c   :  { %v775_v37 = vadd.f32 %v773_v47, %v769_v62 }
 0x24d   :  { %v780_v32 = vadd.f32 %v778_v53, %v774_v0 }
 0x24e   :  { %v781_v10 = vadd.f32 %v779_v38, %v775_v37 }
 0x24f   :  { %v786_v40 = vadd.f32 %v784_v5, %v780_v32 }
 0x250   :  { %v787_v25 = vadd.f32 %v785_v45, %v781_v10 }
 0x251   :  { %v792_v12 = vadd.f32 %v790_v59, %v786_v40 }
 0x252   :  { %v793_v16 = vadd.f32 %v791_v61, %v787_v25 }
 0x253   :  { %v798_v14 = vadd.f32 %v796_v49, %v792_v12 }
 0x254   :  { %v799_v52 = vadd.f32 %v797_v50, %v793_v16 }
 0x255   :  { %v804_v60 = vadd.f32 %v802_v15, %v798_v14 }
 0x256   :  { %v805_v13 = vadd.f32 %v803_v36, %v799_v52 }
 0x257   :  { %v810_v33 = vadd.f32 %v808_v17, %v804_v60 }
 0x258   :  { %v811_v6 = vadd.f32 %v809_v4, %v805_v13 }
 0x259   :  { %v812_v55 = vmax.f32 %v810_v33, 0.0 }
 0x25a   :  { %v813_v35 = vmax.f32 %v811_v6, 0.0 }
 0x25b   :  { %v814_v54 = vperm.slane %v812_v55, 0  ;;  %v820_v18 = vperm.slane %v812_v55, 1  ;;  %v826_v43 = vperm.slane %v812_v55, 2  ;;  %v832_v21 = vperm.slane %v812_v55, 3 }
 0x25c   :  { %v815_v8 = vperm.slane %v813_v35, 0  ;;  %v821_v11 = vperm.slane %v813_v35, 1  ;;  %v838_v30 = vperm.slane %v812_v55, 4  ;;  %v827_v2 = vperm.slane %v813_v35, 2 }
 0x25d   :  { %v816_v20 = vmul.f32 %v814_v54, %v1642_v42  ;;  %v822_v19 = vmul.f32 %v820_v18, %v1644_v63  ;;  %v828_v0 = vmul.f32 %v826_v43, %v1645_v39  ;;  %v834_v46 = vmul.f32 %v832_v21, %v1646_v3 }
 0x25e   :  { %v817_v22 = vmul.f32 %v815_v8, %v1642_v42  ;;  %v823_v23 = vmul.f32 %v821_v11, %v1644_v63  ;;  %v833_v62 = vperm.slane %v813_v35, 3  ;;  %v840_v47 = vmul.f32 %v838_v30, %v1483_v58 }
 0x25f   :  { %v818_v56 = vadd.f32 %v816_v20, %v1643_v26  ;;  %v844_v27 = vperm.slane %v812_v55, 5  ;;  %v829_v59 = vmul.f32 %v827_v2, %v1645_v39  ;;  %v839_v40 = vperm.slane %v813_v35, 4 }
 0x260   :  { %v819_v5 = vadd.f32 %v817_v22, %v1643_v26  ;;  %v835_v38 = vmul.f32 %v833_v62, %v1646_v3  ;;  %v845_v31 = vperm.slane %v813_v35, 5  ;;  %v850_v49 = vperm.slane %v812_v55, 6 }
 0x261   :  { %v824_v53 = vadd.f32 %v822_v19, %v818_v56  ;;  %v841_v12 = vmul.f32 %v839_v40, %v1483_v58  ;;  %v846_v10 = vmul.f32 %v844_v27, %v1474_v57  ;;  %v851_v45 = vperm.slane %v813_v35, 6 }
 0x262   :  { %v825_v28 = vadd.f32 %v823_v23, %v819_v5  ;;  %v847_v24 = vmul.f32 %v845_v31, %v1474_v57  ;;  %v857_v14 = vperm.slane %v813_v35, 7  ;;  %v852_v61 = vmul.f32 %v850_v49, %v1486_v7 }
 0x263   :  { %v830_v32 = vadd.f32 %v828_v0, %v824_v53  ;;  %v853_v1 = vmul.f32 %v851_v45, %v1486_v7  ;;  %v856_v44 = vperm.slane %v812_v55, 7 }
 0x264   :  { %v831_v37 = vadd.f32 %v829_v59, %v825_v28  ;;  %v859_v16 = vmul.f32 %v857_v14, %v1493_v29 }
 0x265   :  { %v836_v48 = vadd.f32 %v834_v46, %v830_v32  ;;  %v858_v58 = vmul.f32 %v856_v44, %v1493_v29 }
 0x266   :  { %v837_v9 = vadd.f32 %v835_v38, %v831_v37 }
 0x267   :  { %v842_v41 = vadd.f32 %v840_v47, %v836_v48 }
 0x268   :  { %v843_v34 = vadd.f32 %v841_v12, %v837_v9 }
 0x269   :  { %v848_v15 = vadd.f32 %v846_v10, %v842_v41 }
 0x26a   :  { %v849_v25 = vadd.f32 %v847_v24, %v843_v34 }
 0x26b   :  { %v854_v17 = vadd.f32 %v852_v61, %v848_v15 }
 0x26c   :  { %v855_v60 = vadd.f32 %v853_v1, %v849_v25 }
 0x26d   :  { %v860_v57 = vadd.f32 %v858_v58, %v854_v17 }
 0x26e   :  { %v861_v50 = vadd.f32 %v859_v16, %v855_v60 }
 0x270   :  { %v864_v51 = vrot.slane %v861_v50, 4 }
 0x272   :  { %v865_v7 = vsel %vm554_vm3, %v860_v57, %v864_v51 }
 0x273   :  { %868 = vst [vmem:[#allocation2 + $0x8] sm:$0xff] %v865_v7 }
 0x274   :  { %879 = dma.vmem_to_hbm [thread:$0]  %s875_s7, 256, %s877_s13, [#allocation3]  }
 0x275   :  { %999 = dma.done.wait [#allocation3], 256  }
 0x276   :  { %1000 = vsyncadd [#allocation3], 4294967040 }
 0x277   :  { %884 = vsyncpa [#allocation3], 1 }

</bundles_post_ra>
